<compile_context>
chip_gen: v5e
topology: v5e:2x2
jax: 0.10.0
libtpu: 0.0.40
codegen_flags: <defaults>
</compile_context>

<pallas_src>
from itertools import product
import math

import numpy as np
import jax
import jax.numpy as jnp
from jax.experimental import pallas as pl
from jax.experimental.pallas import tpu as pltpu


def _round_up(v, m):
    return ((v + m - 1) // m) * m


def build_density_constants(L_np, k_max):
    """Mirror of Ergodicity_Loss.compute_fourier_coefficients_density, including
    the reference implementation's normalization quirk (`normal` is reset inside
    the loop, so only the last state dim contributes to h_k)."""
    in_dim = L_np.shape[0]
    shape = (k_max,) * in_dim
    coeffs_density = np.zeros(shape, np.float32)
    norm = np.zeros(shape, np.float32)
    for sets in product(range(k_max), repeat=in_dim):
        kv = np.array(sets, np.float64) * np.pi / L_np
        coeff = 1.0 + 0.0j
        for i in range(in_dim):
            Li = float(L_np[i])
            ki = kv[i]
            integral = (np.exp(1j * ki * Li) - 1.0) / (1j * ki) if ki != 0 else Li
            coeff *= integral / Li
        coeffs_density[sets] = np.float32(coeff.real)
        normal = 1.0
        for i, value in enumerate(sets):
            normal = 1.0
            if value == 0:
                continue
            normal = normal * math.sqrt(float(L_np[i]) / 2.0)
        norm[sets] = np.float32(normal)
    coeffs_density = coeffs_density / norm
    return coeffs_density, norm


def _make_kernel(B_tile, D, Dl_eff, TM, M_total, M_pad):
    """Kernel closure captures only static Python ints/bools."""
    need_mask = (M_pad != M_total)

    def kernel(x_ref, wl_ref, wr_ref, scale_ref, target_ref, out_ref, acc_ref):
        # x_ref     : [D, B_tile, TM]     lane-dense samples for all state dims
        # wl_ref    : [KL_pad, Dl_eff]    flattened left-mode frequencies k_d*pi/L_d
        # wr_ref    : [k8, 1]             last-dim frequencies i*pi/L_{D-1} (column)
        # scale_ref : [KL_pad, k8]        1/(N*T*h_k), zero on padded modes
        # target_ref: [KL_pad, k8]        density coefficients, zero on padding
        # out_ref   : [B_tile, k8]        per-batch, per-lane partial SSE
        # acc_ref   : [B_tile, KL_pad, k8] VMEM scratch accumulator (f32)
        m = pl.program_id(1)

        @pl.when(m == 0)
        def _():
            acc_ref[...] = jnp.zeros_like(acc_ref)

        wr = wr_ref[...]                                        # [k8, 1]
        if need_mask:
            col = jax.lax.broadcasted_iota(jnp.int32, (1, TM), 1) + m * TM
            mask = (col < M_total).astype(jnp.float32)          # [1, TM]

        for bi in range(B_tile):                                # static unroll (<= 8)
            x_last = x_ref[D - 1, bi:bi + 1, :]                 # [1, TM]
            right = jnp.cos(wr * x_last)                        # [k8, TM] lane-dense M
            if need_mask:
                right = right * mask                            # zero padded samples
            x0 = x_ref[0, bi:bi + 1, :]                         # [1, TM]
            left = jnp.cos(wl_ref[:, 0:1] * x0)                 # [KL_pad, TM]
            for d in range(1, Dl_eff):
                xd = x_ref[d, bi:bi + 1, :]
                left = left * jnp.cos(wl_ref[:, d:d + 1] * xd)
            # All Fourier coefficients of this M-tile via one MXU contraction
            # over the sample axis (contract last dims of both operands).
            c = jax.lax.dot_general(
                left, right, (((1,), (1,)), ((), ())),
                preferred_element_type=jnp.float32)             # [KL_pad, k8]
            acc_ref[bi] = acc_ref[bi] + c

        @pl.when(m == pl.num_programs(1) - 1)
        def _():
            scale = scale_ref[...]
            target = target_ref[...]
            for bi in range(B_tile):
                diff = acc_ref[bi] * scale - target             # padded modes -> 0
                out_ref[bi:bi + 1, :] = jnp.sum(diff * diff, axis=0, keepdims=True)

    return kernel


def ergodicity_loss(x, u=None, L=None, k_max=10, control_energy_reg=1e-3):
    """x: [T, B, N_agents, in_dim] float32;  u (optional): any shape (summed)."""
    T, B, N, D = x.shape
    L_np = np.ones((D,), np.float64) if L is None else np.asarray(L, np.float64)

    coeffs_density, norm = build_density_constants(L_np, k_max)
    K = k_max ** D
    M = T * N

    Dl = D - 1
    Dl_eff = max(Dl, 1)
    KL = k_max ** Dl                       # modes of dims 0..D-2 (1 if D == 1)
    KL_pad = _round_up(max(KL, 1), 8)
    k8 = _round_up(k_max, 8)               # lane-padded trailing mode count (small!)

    # --- host-side constant tables -------------------------------------------------
    if Dl > 0:
        mesh = np.stack(np.meshgrid(*([np.arange(k_max)] * Dl), indexing="ij"), axis=-1)
        k_left = mesh.reshape(KL, Dl).astype(np.float64)        # C-order flattening
        wl_np = np.zeros((KL_pad, Dl_eff), np.float32)
        wl_np[:KL, :] = (np.pi * k_left / L_np[None, :Dl]).astype(np.float32)
    else:
        wl_np = np.zeros((KL_pad, 1), np.float32)               # cos(0*x) = 1

    wr_np = np.zeros((k8, 1), np.float32)
    wr_np[:k_max, 0] = (np.pi * np.arange(k_max) / L_np[D - 1]).astype(np.float32)

    norm_flat = norm.reshape(KL, k_max)
    dens_flat = coeffs_density.reshape(KL, k_max)
    scale_np = np.zeros((KL_pad, k8), np.float32)
    scale_np[:KL, :k_max] = 1.0 / (N * T * norm_flat)
    target_np = np.zeros((KL_pad, k8), np.float32)
    target_np[:KL, :k_max] = dens_flat

    # --- tiling: M reduction axis (multiple of 128) + batch parallel axis -----------
    TM_target = 2048                                   # fits v7x/v5e scoped VMEM easily
    TM = min(_round_up(M, 128), TM_target)
    M_pad = _round_up(M, TM)
    n_m = M_pad // TM

    if B <= 8:
        B_tile, B_pad = B, B                           # block == full dim (8,128 rule)
    else:
        B_tile, B_pad = 8, _round_up(B, 8)
    n_b = B_pad // B_tile

    # One lane-dense x input: [D, B_pad, M_pad] with the batch tile on sublanes.
    xf = x.astype(jnp.float32)
    x_dbm = jnp.transpose(xf, (3, 1, 0, 2)).reshape(D, B, M)
    x_dbm = jnp.pad(x_dbm, ((0, 0), (0, B_pad - B), (0, M_pad - M)))

    kernel = _make_kernel(B_tile, D, Dl_eff, TM, M, M_pad)

    partials = pl.pallas_call(
        kernel,
        out_shape=jax.ShapeDtypeStruct((B_pad, k8), jnp.float32),
        grid=(n_b, n_m),
        in_specs=[
            pl.BlockSpec((D, B_tile, TM), lambda b, m: (0, b, m)),    # samples
            pl.BlockSpec((KL_pad, Dl_eff), lambda b, m: (0, 0)),      # left frequencies
            pl.BlockSpec((k8, 1), lambda b, m: (0, 0)),               # right frequencies
            pl.BlockSpec((KL_pad, k8), lambda b, m: (0, 0)),          # 1/(N*T*h_k)
            pl.BlockSpec((KL_pad, k8), lambda b, m: (0, 0)),          # target coeffs
        ],
        out_specs=pl.BlockSpec((B_tile, k8), lambda b, m: (b, 0)),
        scratch_shapes=[pltpu.VMEM((B_tile, KL_pad, k8), jnp.float32)],
        compiler_params=pltpu.CompilerParams(
            dimension_semantics=("parallel", "arbitrary")),
    )(x_dbm, jnp.asarray(wl_np), jnp.asarray(wr_np),
      jnp.asarray(scale_np), jnp.asarray(target_np))

    # Final lane reduce, MSE scaling, and control-energy term in plain JAX.
    sse = jnp.sum(partials[:B])
    loss = sse / jnp.float32(B * K)
    if u is not None:
        u2 = jnp.sum(jnp.square(u.astype(jnp.float32)))
        loss = loss + u2 * jnp.float32(control_energy_reg / (2.0 * N * T * B))
    return loss


def reference_loss(x_np, u_np, L_np, k_max, control_energy_reg):
    """Literal numpy port of Ergodicity_Loss.forward (for correctness check)."""
    T, B, N, D = x_np.shape
    coeffs_density, norm = build_density_constants(L_np, k_max)
    coeffs = np.zeros((B,) + (k_max,) * D, np.float64)
    for sets in product(range(k_max), repeat=D):
        kv = np.array(sets, np.float64) * np.pi / L_np
        transform = np.cos(x_np.astype(np.float64) * kv.reshape(1, 1, 1, -1)).prod(axis=-1)
        transform = transform / norm[sets]
        ck = transform.sum(axis=-3).sum(axis=-1) / (N * T)            # [B]
        coeffs[(slice(None),) + sets] = ck
    loss = np.mean((coeffs - coeffs_density[None, ...].astype(np.float64)) ** 2)
    if u_np is not None:
        loss += control_energy_reg * (u_np.astype(np.float64) ** 2).sum() / (2 * N * T * B)
    return loss


if __name__ == "__main__":
    T, B, N, D = 8, 2, 4, 2          # n_timesteps, batch, N_Agents, in_dim
    k_max = 10
    reg = 1e-3

    key = jax.random.PRNGKey(0)
    kx, ku = jax.random.split(key)
    x = jax.random.uniform(kx, (T, B, N, D), jnp.float32, 0.0, 1.0)
    u = 0.1 * jax.random.normal(ku, (T, B, N, D), jnp.float32)

    loss = ergodicity_loss(x, u, k_max=k_max, control_energy_reg=reg)
    loss = jax.block_until_ready(loss)

    ref = reference_loss(np.asarray(x), np.asarray(u), np.ones((D,), np.float64), k_max, reg)
    np.testing.assert_allclose(float(loss), float(ref), rtol=2e-3, atol=1e-5)
    print("KERNEL_OK")
</pallas_src>

<mosaic_0001>
module attributes {stable_mosaic.version = 11 : i64} {
  func.func @kernel(%arg0: i32, %arg1: i32, %arg2: memref<2x2x128xf32, #tpu.memory_space<vmem>>, %arg3: memref<16x1xf32, #tpu.memory_space<vmem>>, %arg4: memref<16x1xf32, #tpu.memory_space<vmem>>, %arg5: memref<16x16xf32, #tpu.memory_space<vmem>>, %arg6: memref<16x16xf32, #tpu.memory_space<vmem>>, %arg7: memref<2x16xf32, #tpu.memory_space<vmem>>, %arg8: memref<2x16x16xf32, #tpu.memory_space<vmem>>) attributes {dimension_semantics = [#tpu.dimension_semantics<parallel>, #tpu.dimension_semantics<arbitrary>], iteration_bounds = array<i64: 1, 1>, scalar_prefetch = 0 : i64, scratch_operands = 1 : i64, tpu.core_type = #tpu.core_type<tc>, window_params = [{transform_indices = @transform_0, window_bounds = array<i64: 2, 2, 128>}, {pipeline_mode = #tpu.pipeline_mode<synchronous>, transform_indices = @transform_1, window_bounds = array<i64: 16, 1>}, {pipeline_mode = #tpu.pipeline_mode<synchronous>, transform_indices = @transform_2, window_bounds = array<i64: 16, 1>}, {pipeline_mode = #tpu.pipeline_mode<synchronous>, transform_indices = @transform_3, window_bounds = array<i64: 16, 16>}, {pipeline_mode = #tpu.pipeline_mode<synchronous>, transform_indices = @transform_4, window_bounds = array<i64: 16, 16>}, {transform_indices = @transform_5, window_bounds = array<i64: 2, 16>}]} {
    %c0_i32 = arith.constant 0 : i32
    %0 = arith.cmpi eq, %arg1, %c0_i32 : i32
    %1 = arith.extui %0 : i1 to i32
    %c0_i32_0 = arith.constant 0 : i32
    %2 = arith.cmpi ne, %1, %c0_i32_0 : i32
    scf.if %2 {
      %cst_32 = arith.constant 0.000000e+00 : f32
      %59 = vector.broadcast %cst_32 : f32 to vector<2x16x16xf32>
      %c0_33 = arith.constant 0 : index
      %c0_34 = arith.constant 0 : index
      %c0_35 = arith.constant 0 : index
      %60 = vector.load %arg8[%c0_33, %c0_34, %c0_35] : memref<2x16x16xf32, #tpu.memory_space<vmem>>, vector<2x16x16xf32>
      tpu.vector_store %arg8[%c0_33, %c0_34, %c0_35], %59 {strides = array<i32>} : memref<2x16x16xf32, #tpu.memory_space<vmem>>, vector<2x16x16xf32>,
    } else {
    }
    %c0 = arith.constant 0 : index
    %c0_1 = arith.constant 0 : index
    %3 = vector.load %arg4[%c0, %c0_1] : memref<16x1xf32, #tpu.memory_space<vmem>>, vector<16x1xf32>
    %4 = tpu.iota {dimensions = array<i32: 1>} : vector<1x128xi32>
    %c128_i32 = arith.constant 128 : i32
    %5 = arith.muli %arg1, %c128_i32 : i32
    %6 = vector.broadcast %5 : i32 to vector<1x128xi32>
    %7 = arith.addi %4, %6 : vector<1x128xi32>
    %c32_i32 = arith.constant 32 : i32
    %8 = vector.broadcast %c32_i32 : i32 to vector<1x128xi32>
    %9 = arith.cmpi slt, %7, %8 : vector<1x128xi32>
    %10 = arith.extui %9 : vector<1x128xi1> to vector<1x128xi32>
    %11 = arith.sitofp %10 : vector<1x128xi32> to vector<1x128xf32>
    %c1 = arith.constant 1 : index
    %c0_2 = arith.constant 0 : index
    %c0_3 = arith.constant 0 : index
    %12 = vector.load %arg2[%c1, %c0_2, %c0_3] : memref<2x2x128xf32, #tpu.memory_space<vmem>>, vector<1x1x128xf32>
    %13 = vector.shape_cast %12 : vector<1x1x128xf32> to vector<1x128xf32>
    %14 = vector.broadcast %3 : vector<16x1xf32> to vector<16x128xf32>
    %15 = vector.broadcast %13 : vector<1x128xf32> to vector<16x128xf32>
    %16 = arith.mulf %14, %15 : vector<16x128xf32>
    %17 = math.cos %16 : vector<16x128xf32>
    %18 = vector.broadcast %11 : vector<1x128xf32> to vector<16x128xf32>
    %19 = arith.mulf %17, %18 : vector<16x128xf32>
    %c0_4 = arith.constant 0 : index
    %c0_5 = arith.constant 0 : index
    %c0_6 = arith.constant 0 : index
    %20 = vector.load %arg2[%c0_4, %c0_5, %c0_6] : memref<2x2x128xf32, #tpu.memory_space<vmem>>, vector<1x1x128xf32>
    %21 = vector.shape_cast %20 : vector<1x1x128xf32> to vector<1x128xf32>
    %c0_7 = arith.constant 0 : index
    %c0_8 = arith.constant 0 : index
    %22 = vector.load %arg3[%c0_7, %c0_8] : memref<16x1xf32, #tpu.memory_space<vmem>>, vector<16x1xf32>
    %23 = vector.broadcast %22 : vector<16x1xf32> to vector<16x128xf32>
    %24 = vector.broadcast %21 : vector<1x128xf32> to vector<16x128xf32>
    %25 = arith.mulf %23, %24 : vector<16x128xf32>
    %26 = math.cos %25 : vector<16x128xf32>
    %cst = arith.constant dense<0.000000e+00> : vector<16x16xf32>
    %27 = tpu.matmul %26, %19, %cst {dimension_numbers = #tpu.dot_dimension_numbers<[1], [1], [0], [0], [0, 0, 1, 0], [], []>} : vector<16x128xf32>, vector<16x128xf32>, vector<16x16xf32> -> vector<16x16xf32>
    %c0_9 = arith.constant 0 : index
    %c0_10 = arith.constant 0 : index
    %c0_11 = arith.constant 0 : index
    %28 = vector.load %arg8[%c0_9, %c0_10, %c0_11] : memref<2x16x16xf32, #tpu.memory_space<vmem>>, vector<1x16x16xf32>
    %29 = vector.shape_cast %28 : vector<1x16x16xf32> to vector<16x16xf32>
    %30 = arith.addf %29, %27 : vector<16x16xf32>
    %c0_12 = arith.constant 0 : index
    %c0_13 = arith.constant 0 : index
    %c0_14 = arith.constant 0 : index
    %31 = vector.load %arg8[%c0_12, %c0_13, %c0_14] : memref<2x16x16xf32, #tpu.memory_space<vmem>>, vector<1x16x16xf32>
    %32 = vector.shape_cast %31 : vector<1x16x16xf32> to vector<16x16xf32>
    %33 = vector.shape_cast %30 : vector<16x16xf32> to vector<1x16x16xf32>
    tpu.vector_store %arg8[%c0_12, %c0_13, %c0_14], %33 {strides = array<i32>} : memref<2x16x16xf32, #tpu.memory_space<vmem>>, vector<1x16x16xf32>,
    %c1_15 = arith.constant 1 : index
    %c1_16 = arith.constant 1 : index
    %c0_17 = arith.constant 0 : index
    %34 = vector.load %arg2[%c1_15, %c1_16, %c0_17] : memref<2x2x128xf32, #tpu.memory_space<vmem>>, vector<1x1x128xf32>
    %35 = vector.shape_cast %34 : vector<1x1x128xf32> to vector<1x128xf32>
    %36 = vector.broadcast %3 : vector<16x1xf32> to vector<16x128xf32>
    %37 = vector.broadcast %35 : vector<1x128xf32> to vector<16x128xf32>
    %38 = arith.mulf %36, %37 : vector<16x128xf32>
    %39 = math.cos %38 : vector<16x128xf32>
    %40 = vector.broadcast %11 : vector<1x128xf32> to vector<16x128xf32>
    %41 = arith.mulf %39, %40 : vector<16x128xf32>
    %c0_18 = arith.constant 0 : index
    %c1_19 = arith.constant 1 : index
    %c0_20 = arith.constant 0 : index
    %42 = vector.load %arg2[%c0_18, %c1_19, %c0_20] : memref<2x2x128xf32, #tpu.memory_space<vmem>>, vector<1x1x128xf32>
    %43 = vector.shape_cast %42 : vector<1x1x128xf32> to vector<1x128xf32>
    %c0_21 = arith.constant 0 : index
    %c0_22 = arith.constant 0 : index
    %44 = vector.load %arg3[%c0_21, %c0_22] : memref<16x1xf32, #tpu.memory_space<vmem>>, vector<16x1xf32>
    %45 = vector.broadcast %44 : vector<16x1xf32> to vector<16x128xf32>
    %46 = vector.broadcast %43 : vector<1x128xf32> to vector<16x128xf32>
    %47 = arith.mulf %45, %46 : vector<16x128xf32>
    %48 = math.cos %47 : vector<16x128xf32>
    %cst_23 = arith.constant dense<0.000000e+00> : vector<16x16xf32>
    %49 = tpu.matmul %48, %41, %cst_23 {dimension_numbers = #tpu.dot_dimension_numbers<[1], [1], [0], [0], [0, 0, 1, 0], [], []>} : vector<16x128xf32>, vector<16x128xf32>, vector<16x16xf32> -> vector<16x16xf32>
    %c1_24 = arith.constant 1 : index
    %c0_25 = arith.constant 0 : index
    %c0_26 = arith.constant 0 : index
    %50 = vector.load %arg8[%c1_24, %c0_25, %c0_26] : memref<2x16x16xf32, #tpu.memory_space<vmem>>, vector<1x16x16xf32>
    %51 = vector.shape_cast %50 : vector<1x16x16xf32> to vector<16x16xf32>
    %52 = arith.addf %51, %49 : vector<16x16xf32>
    %c1_27 = arith.constant 1 : index
    %c0_28 = arith.constant 0 : index
    %c0_29 = arith.constant 0 : index
    %53 = vector.load %arg8[%c1_27, %c0_28, %c0_29] : memref<2x16x16xf32, #tpu.memory_space<vmem>>, vector<1x16x16xf32>
    %54 = vector.shape_cast %53 : vector<1x16x16xf32> to vector<16x16xf32>
    %55 = vector.shape_cast %52 : vector<16x16xf32> to vector<1x16x16xf32>
    tpu.vector_store %arg8[%c1_27, %c0_28, %c0_29], %55 {strides = array<i32>} : memref<2x16x16xf32, #tpu.memory_space<vmem>>, vector<1x16x16xf32>,
    %c0_i32_30 = arith.constant 0 : i32
    %56 = arith.cmpi eq, %arg1, %c0_i32_30 : i32
    %57 = arith.extui %56 : i1 to i32
    %c0_i32_31 = arith.constant 0 : i32
    %58 = arith.cmpi ne, %57, %c0_i32_31 : i32
    scf.if %58 {
      %c0_32 = arith.constant 0 : index
      %c0_33 = arith.constant 0 : index
      %59 = vector.load %arg5[%c0_32, %c0_33] : memref<16x16xf32, #tpu.memory_space<vmem>>, vector<16x16xf32>
      %c0_34 = arith.constant 0 : index
      %c0_35 = arith.constant 0 : index
      %60 = vector.load %arg6[%c0_34, %c0_35] : memref<16x16xf32, #tpu.memory_space<vmem>>, vector<16x16xf32>
      %c0_36 = arith.constant 0 : index
      %c0_37 = arith.constant 0 : index
      %c0_38 = arith.constant 0 : index
      %61 = vector.load %arg8[%c0_36, %c0_37, %c0_38] : memref<2x16x16xf32, #tpu.memory_space<vmem>>, vector<1x16x16xf32>
      %62 = vector.shape_cast %61 : vector<1x16x16xf32> to vector<16x16xf32>
      %63 = arith.mulf %62, %59 : vector<16x16xf32>
      %64 = arith.subf %63, %60 : vector<16x16xf32>
      %65 = arith.mulf %64, %64 : vector<16x16xf32>
      %cst_39 = arith.constant dense<0.000000e+00> : vector<16xf32>
      %66 = vector.multi_reduction <add>, %65, %cst_39 [0] : vector<16x16xf32> to vector<16xf32>
      %67 = vector.shape_cast %66 : vector<16xf32> to vector<1x16xf32>
      %c0_40 = arith.constant 0 : index
      %c0_41 = arith.constant 0 : index
      %68 = vector.load %arg7[%c0_40, %c0_41] : memref<2x16xf32, #tpu.memory_space<vmem>>, vector<1x16xf32>
      tpu.vector_store %arg7[%c0_40, %c0_41], %67 {strides = array<i32>} : memref<2x16xf32, #tpu.memory_space<vmem>>, vector<1x16xf32>,
      %c1_42 = arith.constant 1 : index
      %c0_43 = arith.constant 0 : index
      %c0_44 = arith.constant 0 : index
      %69 = vector.load %arg8[%c1_42, %c0_43, %c0_44] : memref<2x16x16xf32, #tpu.memory_space<vmem>>, vector<1x16x16xf32>
      %70 = vector.shape_cast %69 : vector<1x16x16xf32> to vector<16x16xf32>
      %71 = arith.mulf %70, %59 : vector<16x16xf32>
      %72 = arith.subf %71, %60 : vector<16x16xf32>
      %73 = arith.mulf %72, %72 : vector<16x16xf32>
      %cst_45 = arith.constant dense<0.000000e+00> : vector<16xf32>
      %74 = vector.multi_reduction <add>, %73, %cst_45 [0] : vector<16x16xf32> to vector<16xf32>
      %75 = vector.shape_cast %74 : vector<16xf32> to vector<1x16xf32>
      %c1_46 = arith.constant 1 : index
      %c0_47 = arith.constant 0 : index
      %76 = vector.load %arg7[%c1_46, %c0_47] : memref<2x16xf32, #tpu.memory_space<vmem>>, vector<1x16xf32>
      tpu.vector_store %arg7[%c1_46, %c0_47], %75 {strides = array<i32>} : memref<2x16xf32, #tpu.memory_space<vmem>>, vector<1x16xf32>,
    } else {
    }
    return
  }
  func.func @transform_0(%arg0: i32, %arg1: i32) -> (i32, i32, i32) {
    %c0_i32 = arith.constant 0 : i32
    %c0_i32_0 = arith.constant 0 : i32
    return %c0_i32, %arg0, %arg1 : i32, i32, i32
  }
  func.func @transform_1(%arg0: i32, %arg1: i32) -> (i32, i32) {
    %c0_i32 = arith.constant 0 : i32
    %c0_i32_0 = arith.constant 0 : i32
    %c0_i32_1 = arith.constant 0 : i32
    return %c0_i32, %c0_i32_0 : i32, i32
  }
  func.func @transform_2(%arg0: i32, %arg1: i32) -> (i32, i32) {
    %c0_i32 = arith.constant 0 : i32
    %c0_i32_0 = arith.constant 0 : i32
    %c0_i32_1 = arith.constant 0 : i32
    return %c0_i32, %c0_i32_0 : i32, i32
  }
  func.func @transform_3(%arg0: i32, %arg1: i32) -> (i32, i32) {
    %c0_i32 = arith.constant 0 : i32
    %c0_i32_0 = arith.constant 0 : i32
    %c0_i32_1 = arith.constant 0 : i32
    return %c0_i32, %c0_i32_0 : i32, i32
  }
  func.func @transform_4(%arg0: i32, %arg1: i32) -> (i32, i32) {
    %c0_i32 = arith.constant 0 : i32
    %c0_i32_0 = arith.constant 0 : i32
    %c0_i32_1 = arith.constant 0 : i32
    return %c0_i32, %c0_i32_0 : i32, i32
  }
  func.func @transform_5(%arg0: i32, %arg1: i32) -> (i32, i32) {
    %c0_i32 = arith.constant 0 : i32
    %c0_i32_0 = arith.constant 0 : i32
    return %arg0, %c0_i32 : i32, i32
  }
}

</mosaic_0001>

<bundles_post_ra>
// kernel: tpu_custom_call.1
= control target key start
LH: loop header
LB: loop body
LE: loop exit
PB: predicated region body
PF: predicated region fallthrough
CT: control target
= control target key end

     0   :  { %10 = vsyncpa [#allocation4], 0  ;;  %s2818_s0 = inlined_call_operand.hbm [shape: f32[2,2,128], index: 0, kind: input, shape index: {}]   ;;  %s2819_s1 = inlined_call_operand.vmem [shape: f32[16,1], index: 1, kind: input, shape index: {}]   ;;  %s2820_s2 = inlined_call_operand.vmem [shape: f32[16,1], index: 2, kind: input, shape index: {}]   ;;  %s2821_s3 = inlined_call_operand.vmem [shape: f32[16,16], index: 3, kind: input, shape index: {}]   ;;  %s2822_s4 = inlined_call_operand.vmem [shape: f32[16,16], index: 4, kind: input, shape index: {}]   ;;  %s2823_s5 = inlined_call_operand.hbm [shape: f32[2,16], index: 5, kind: output, shape index: {}]  }
   0x1   :  { %11 = vsyncpa [#allocation5], 0  ;;  %s16_s20 = sshll.u32 %s2818_s0, 4  ;;  %s1564_s21 = smov [#allocation3]   ;;  %s17_s20 = int_to_ptr.hbm [resolvable:$true] %s16_s20 }
   0x2   :  { %s18_s22 = sshll.u32 %s1564_s21, 4  ;;  %s1565_s23 = smov 32   ;;  %s19_s22 = int_to_ptr.vmem [resolvable:$true] %s18_s22 }
   0x3   :  { %s1566_s24 = smov 2  }
   0x4   :  { %24 = dma.hbm_to_vmem [thread:$0]  %s17_s20, 64, %s19_s22, [#allocation4], %s1565_s23, %s1565_s23, %s1566_s24  }
   0x5   :  { %1560 = dma.done.wait [#allocation4], 64  }
   0x6   :  { %1561 = vsyncadd [#allocation4], 4294967232  ;;  %v2827_v0 = vmov 0   ;;  %v383_v1 = vld [vmem:[%s2819_s1 + $0x8] sm:$0xff]  ;;  %v382_v2 = vld [vmem:[%s2819_s1] sm:$0xff]  ;;  %s1454_s15 = sshll.u32 %s2823_s5, 4  ;;  %s1455_s15 = int_to_ptr.hbm [resolvable:$true] %s1454_s15 }
   0x7   :  { %1507 = vset.pattern.permute.xlu2 %v2827_v0  ;;  %1506 = vset.pattern.permute.xlu1 %v2827_v0  ;;  %v47_v3 = vld [vmem:[%s2820_s2 + $0x8] sm:$0xff]  ;;  %v46_v4 = vld [vmem:[%s2820_s2] sm:$0xff]  ;;  %v2831_v20 = vmov 920167782   ;;  %v2829_v23 = vmov 1326507024  }
   0x8   :  { %1505 = vset.pattern.permute.xlu0 %v2827_v0  ;;  %391 = vperm.xlu1 %1506, %v383_v1   ;;  %v1508_v5 = vld [vmem:[#allocation3] ss:$0 sm:$0xff]  ;;  %v1509_v10 = vld [vmem:[#allocation3 + $0x1] ss:$0 sm:$0xff]  ;;  %v1510_v29 = vld [vmem:[#allocation3 + $0x2] ss:$0 sm:$0xff] }
   0x9   :  { %386 = vperm.xlu2 %1507, %v382_v2   ;;  %65 = vperm.xlu0 %1505, %v47_v3   ;;  %v1511_v30 = vld [vmem:[#allocation3 + $0x3] ss:$0 sm:$0xff]  ;;  %v2833_v56 = vmov 2102212464  }
  0x10   :  { %1059 = vperm.xlu1 %1506, %v383_v1  }
  0x11   :  { %1054 = vperm.xlu2 %1507, %v382_v2   ;;  %60 = vperm.xlu0 %1505, %v46_v4  }
  0x63   :  { %v387_v6 = vpop.permute.xlu2 %386 }
  0x64   :  { %v1624_v7 = vmul.f32 %v1508_v5, %v387_v6 }
  0x66   :  { %2886 = vst [vmem:[#allocation9_spill] sm:$0xff] %v1624_v7  ;;  %v400_v8 = vand.u32 2139095040, %v1624_v7 }
  0x68   :  { %v401_v9 = vshrl.u32 %v400_v8, 23 }
  0x6a   :  { %v1471_v11 = vadd.s32 4294967169, %v401_v9 }
  0x6b   :  { %v1055_v12 = vpop.permute.xlu2 %1054 }
  0x6c   :  { %v407_v13 = vadd.s32 1, %v1471_v11  ;;  %v1627_v14 = vmul.f32 %v1509_v10, %v1055_v12 }
  0x6e   :  { %2887 = vst [vmem:[#allocation10_spill] sm:$0xff] %v1627_v14  ;;  %vm408_vm0 = vcmp.gt.s32.totalorder %v407_v13, 0  ;;  %v1068_v15 = vand.u32 2139095040, %v1627_v14  ;;  %v2918_v14 = vmov 920167782  }
  0x6f   :  { %v409_v16 = vsel %vm408_vm0, %v407_v13, 0 }
  0x70   :  { %v1630_v17 = vand.u32 31, %v409_v16  ;;  %v1069_v18 = vshrl.u32 %v1068_v15, 23  ;;  %v1684_v62 = vshrl.u32 %v409_v16, 5 }
  0x72   :  { %2888 = vst [vmem:[#allocation11_spill] sm:$0xff] %v1630_v17  ;;  %v1633_v19 = vsub.s32 32, %v1630_v17  ;;  %v1637_v21 = vshll.u32 %v2831_v20, %v1630_v17  ;;  %v1483_v22 = vadd.s32 4294967169, %v1069_v18  ;;  %v423_v57 = vshll.u32 %v2833_v56, %v1630_v17 }
  0x73   :  { %2900 = vst [vmem:[#allocation23_spill] sm:$0xff] %v1684_v62  ;;  %vm432_vm5 = vcmp.lt.s32.totalorder %v1684_v62, 4 }
  0x74   :  { %2889 = vst [vmem:[#allocation12_spill] sm:$0xff] %v1633_v19  ;;  %v427_v24 = vshrl.u32 %v2829_v23, %v1633_v19  ;;  %v1075_v25 = vadd.s32 1, %v1483_v22  ;;  %v424_v58 = vshrl.u32 %v2831_v20, %v1633_v19  ;;  %v2923_v19 = vmov 0  }
  0x76   :  { %v428_v26 = vor.u32 %v427_v24, %v1637_v21  ;;  %vm1076_vm1 = vcmp.gt.s32.totalorder %v1075_v25, 0  ;;  %v1693_v4 = vor.u32 %v424_v58, %v423_v57  ;;  %v48_v57 = vlaneseq }
  0x77   :  { %v1077_v27 = vsel %vm1076_vm1, %v1075_v25, 0 }
  0x78   :  { %v1642_v28 = vand.u32 31, %v1077_v27  ;;  %2902 = vst [vmem:[#allocation25_spill] sm:$0xff] %v1693_v4  ;;  %v1709_v16 = vsel %vm432_vm5, %v1693_v4, 920167782  ;;  %v1713_v18 = vsel %vm432_vm5, %v428_v26, 1326507024 }
  0x79   :  { %2904 = vst [vmem:[#allocation27_spill] sm:$0xff] %v1709_v16  ;;  %v1716_v22 = vshrl.u32 %v1077_v27, 5 }
  0x7a   :  { %2890 = vst [vmem:[#allocation13_spill] sm:$0xff] %v1642_v28  ;;  %v1645_v31 = vsub.s32 32, %v1642_v28  ;;  %v1649_v32 = vshll.u32 %v2831_v20, %v1642_v28  ;;  %v392_v33 = vpop.permute.xlu1 %391 }
  0x7b   :  { %v1651_v34 = vmul.f32 %v1508_v5, %v392_v33  ;;  %v66_v35 = vpop.permute.xlu0 %65  ;;  %2905 = vst [vmem:[#allocation28_spill] sm:$0xff] %v1713_v18  ;;  %v2845_v5 = vmov 683565275  }
  0x7c   :  { %2891 = vst [vmem:[#allocation14_spill] sm:$0xff] %v1645_v31  ;;  %v1655_v36 = vshrl.u32 %v2829_v23, %v1645_v31  ;;  %v1657_v37 = vmul.f32 %v1510_v29, %v66_v35  ;;  %v1659_v38 = vmul.f32 %v1511_v30, %v66_v35 }
  0x7d   :  { %2892 = vst [vmem:[#allocation15_spill] sm:$0xff] %v1649_v32  ;;  %v554_v39 = vand.u32 2139095040, %v1651_v34 }
  0x7e   :  { %2893 = vst [vmem:[#allocation16_spill] sm:$0xff] %v1651_v34  ;;  %v228_v41 = vand.u32 2139095040, %v1657_v37  ;;  %v896_v42 = vand.u32 2139095040, %v1659_v38  ;;  %v2826_v11 = vand.u32 2147483647, %v1657_v37 }
  0x7f   :  { %2894 = vst [vmem:[#allocation17_spill] sm:$0xff] %v1655_v36  ;;  %v555_v43 = vshrl.u32 %v554_v39, 23 }
  0x80   :  { %v229_v44 = vshrl.u32 %v228_v41, 23  ;;  %v897_v45 = vshrl.u32 %v896_v42, 23  ;;  %2906 = vst [vmem:[#allocation29_spill] sm:$0xff] %v1716_v22  ;;  %v1729_v26 = vand.u32 8388607, %v2826_v11  ;;  %v2837_v11 = vmov 0.0  }
  0x81   :  { %v1474_v46 = vadd.s32 4294967169, %v555_v43 }
  0x82   :  { %v1468_v47 = vadd.s32 4294967169, %v229_v44  ;;  %v1480_v48 = vadd.s32 4294967169, %v897_v45  ;;  %v1060_v50 = vpop.permute.xlu1 %1059 }
  0x83   :  { %v561_v49 = vadd.s32 1, %v1474_v46  ;;  %v1668_v54 = vmul.f32 %v1509_v10, %v1060_v50  ;;  %v61_v61 = vpop.permute.xlu0 %60 }
  0x84   :  { %v235_v51 = vadd.s32 1, %v1468_v47  ;;  %v903_v53 = vadd.s32 1, %v1480_v48  ;;  %v1691_v3 = vmul.f32 %v1510_v29, %v61_v61  ;;  %v1700_v10 = vmul.f32 %v1511_v30, %v61_v61 }
  0x85   :  { %vm562_vm2 = vcmp.gt.s32.totalorder %v561_v49, 0  ;;  %2896 = vst [vmem:[#allocation19_spill] sm:$0xff] %v1668_v54  ;;  %v1222_v63 = vand.u32 2139095040, %v1668_v54  ;;  %v1723_v30 = vshll.u32 %v2833_v56, %v1642_v28 }
  0x86   :  { %v1666_v52 = vsel %vm562_vm2, %v561_v49, 0  ;;  %vm236_vm3 = vcmp.gt.s32.totalorder %v235_v51, 0  ;;  %vm904_vm4 = vcmp.gt.s32.totalorder %v903_v53, 0  ;;  %2903 = vst [vmem:[#allocation26_spill] sm:$0xff] %v1700_v10  ;;  %v74_v15 = vand.u32 2139095040, %v1691_v3 }
  0x87   :  { %2895 = vst [vmem:[#allocation18_spill] sm:$0xff] %v1666_v52  ;;  %v1671_v55 = vand.u32 31, %v1666_v52  ;;  %v237_v2 = vsel %vm236_vm3, %v235_v51, 0  ;;  %v905_v6 = vsel %vm904_vm4, %v903_v53, 0  ;;  %v1223_v9 = vshrl.u32 %v1222_v63, 23 }
  0x88   :  { %v1698_v8 = vand.u32 31, %v237_v2  ;;  %v1703_v12 = vand.u32 31, %v905_v6  ;;  %v2825_v21 = vand.u32 2147483647, %v1691_v3  ;;  %v75_v29 = vshrl.u32 %v74_v15, 23  ;;  %2907 = vst [vmem:[#allocation30_spill] sm:$0xff] %v1723_v30 }
  0x89   :  { %2897 = vst [vmem:[#allocation20_spill] sm:$0xff] %v1671_v55  ;;  %v1678_v59 = vsub.s32 32, %v1671_v55  ;;  %v1682_v60 = vshll.u32 %v2831_v20, %v1671_v55  ;;  %v1486_v13 = vadd.s32 4294967169, %v1223_v9  ;;  %v2824_v33 = vand.u32 2147483647, %v1700_v10 }
  0x8a   :  { %v1719_v24 = vsub.s32 32, %v1698_v8  ;;  %v742_v35 = vand.u32 2139095040, %v1700_v10  ;;  %v1731_v39 = vshrl.u32 %v237_v2, 5  ;;  %v1734_v27 = vsub.s32 32, %v1703_v12 }
  0x8b   :  { %2898 = vst [vmem:[#allocation21_spill] sm:$0xff] %v1678_v59  ;;  %v1689_v1 = vshrl.u32 %v2829_v23, %v1678_v59  ;;  %v1229_v25 = vadd.s32 1, %v1486_v13  ;;  %v1465_v41 = vadd.s32 4294967169, %v75_v29  ;;  %v1736_v42 = vshrl.u32 %v905_v6, 5 }
  0x8c   :  { %2899 = vst [vmem:[#allocation22_spill] sm:$0xff] %v1682_v60  ;;  %v78_v44 = vand.u32 8388607, %v2825_v21  ;;  %v743_v45 = vshrl.u32 %v742_v35, 23  ;;  %v251_v46 = vshll.u32 %v2833_v56, %v1698_v8  ;;  %v252_v47 = vshrl.u32 %v2831_v20, %v1719_v24 }
  0x8d   :  { %2901 = vst [vmem:[#allocation24_spill] sm:$0xff] %v1689_v1  ;;  %vm1230_vm6 = vcmp.gt.s32.totalorder %v1229_v25, 0  ;;  %v81_v49 = vadd.s32 1, %v1465_v41  ;;  %v255_v50 = vshrl.u32 %v2829_v23, %v1719_v24  ;;  %v746_v53 = vand.u32 8388607, %v2824_v33 }
  0x8e   :  { %v1738_v43 = vsel %vm1230_vm6, %v1229_v25, 0  ;;  %v1477_v51 = vadd.s32 4294967169, %v743_v45  ;;  %v254_v58 = vshll.u32 %v2831_v20, %v1698_v8  ;;  %v919_v61 = vshll.u32 %v2833_v56, %v1703_v12 }
  0x8f   :  { %2908 = vst [vmem:[#allocation31_spill] sm:$0xff] %v1738_v43  ;;  %v1747_v48 = vand.u32 31, %v1738_v43  ;;  %v920_v63 = vshrl.u32 %v2831_v20, %v1734_v27  ;;  %v923_v6 = vshrl.u32 %v2829_v23, %v1734_v27  ;;  %v79_v9 = vor.u32 8388608, %v78_v44 }
  0x90   :  { %vm82_vm7 = vcmp.gt.s32.totalorder %v81_v49, 0  ;;  %v749_v13 = vadd.s32 1, %v1477_v51  ;;  %v1764_v15 = vor.u32 %v252_v47, %v251_v46  ;;  %v256_v41 = vor.u32 %v255_v50, %v254_v58 }
  0x91   :  { %2909 = vst [vmem:[#allocation32_spill] sm:$0xff] %v1747_v48  ;;  %v1760_v2 = vsub.s32 32, %v1747_v48  ;;  %v1768_v25 = vshll.u32 %v2831_v20, %v1747_v48  ;;  %v83_v35 = vsel %vm82_vm7, %v81_v49, 0  ;;  %v922_v45 = vshll.u32 %v2831_v20, %v1703_v12 }
  0x92   :  { %v747_v40 = vor.u32 8388608, %v746_v53  ;;  %v49_v33 = vand.u32 127, %v48_v57  ;;  %v1776_v44 = vor.u32 %v920_v63, %v919_v61  ;;  %v85_v47 = vand.u32 31, %v83_v35 }
  0x93   :  { %2910 = vst [vmem:[#allocation33_spill] sm:$0xff] %v1760_v2  ;;  %v1772_v29 = vshrl.u32 %v2829_v23, %v1760_v2  ;;  %vm750_vm8 = vcmp.gt.s32.totalorder %v749_v13, 0  ;;  %v1782_v51 = vshrl.u32 %v2831_v20, %v1645_v31  ;;  %vm260_vm9 = vcmp.lt.s32.totalorder %v1731_v39, 4 }
  0x94   :  { %2911 = vst [vmem:[#allocation34_spill] sm:$0xff] %v1768_v25  ;;  %v924_v49 = vor.u32 %v923_v6, %v922_v45  ;;  %v1785_v50 = vshll.u32 %v79_v9, 8  ;;  %v1789_v53 = vshll.u32 %v2833_v56, %v1671_v55  ;;  %v1794_v57 = vsel %vm260_vm9, %v1764_v15, 920167782 }
  0x95   :  { %2912 = vst [vmem:[#allocation35_spill] sm:$0xff] %v1772_v29  ;;  %vm928_vm10 = vcmp.lt.s32.totalorder %v1736_v42, 4  ;;  %v751_v61 = vsel %vm750_vm8, %v749_v13, 0  ;;  %v1798_v63 = vshll.u32 %v747_v40, 8  ;;  %vm53_vm11 = vcmp.lt.s32.totalorder %v49_v33, 32 }
  0x96   :  { %2913 = vst [vmem:[#allocation36_spill] sm:$0xff] %v1782_v51  ;;  %v1802_v6 = vshrl.u32 %v2831_v20, %v1678_v59  ;;  %v270_v9 = vsel %vm260_vm9, %v256_v41, 1326507024  ;;  %v1809_v45 = vsel %vm928_vm10, %v1776_v44, 920167782  ;;  %v1811_v46 = vsub.s32 32, %v85_v47 }
  0x97   :  { %2914 = vst [vmem:[#allocation37_spill] sm:$0xff] %v1789_v53  ;;  %v1815_v13 = vsel %vm928_vm10, %v924_v49, 1326507024  ;;  %v1818_v40 = vand.u32 65535, %v1785_v50  ;;  %v1821_v33 = vshrl.u32 %v1785_v50, 16  ;;  %v1825_v41 = vshrl.u32 %v2845_v5, %v1719_v24 }
  0x98   :  { %2915 = vst [vmem:[#allocation38_spill] sm:$0xff] %v1798_v63  ;;  %v1827_v21 = vand.u32 31, %v751_v61  ;;  %v1830_v0 = vsel %vm53_vm11, 1.0, %v2837_v11  ;;  %v242_v49 = vshll.u32 %v2845_v5, %v1698_v8  ;;  %v2856_v58 = vmov 2475754826  }
  0x99   :  { %2916 = vst [vmem:[#allocation39_spill] sm:$0xff] %v1802_v6  ;;  %v243_v23 = vshrl.u32 %v2856_v58, %v1719_v24  ;;  %v1836_v20 = vshrl.u32 %v83_v35, 5  ;;  %v88_v56 = vshll.u32 %v2845_v5, %v85_v47  ;;  %v1840_v25 = vand.u32 65535, %v1798_v63 }
  0x9a   :  { %v1843_v29 = vshrl.u32 %v1798_v63, 16  ;;  %v89_v11 = vshrl.u32 %v2856_v58, %v1811_v46  ;;  %v91_v54 = vshll.u32 %v2856_v58, %v85_v47  ;;  %v2860_v2 = vmov 2131351028  }
  0x9b   :  { %v92_v48 = vshrl.u32 %v2860_v2, %v1811_v46  ;;  %v1851_v35 = vsub.s32 32, %v1827_v21  ;;  %v94_v5 = vshll.u32 %v2860_v2, %v85_v47  ;;  %v2917_v43 = vmov 2102212464  }
  0x9c   :  { %v95_v31 = vshrl.u32 %v2917_v43, %v1811_v46  ;;  %v97_v28 = vshll.u32 %v2917_v43, %v85_v47  ;;  %v100_v32 = vshll.u32 %v2918_v14, %v85_v47  ;;  %v98_v36 = vshrl.u32 %v2918_v14, %v1811_v46 }
  0x9d   :  { %v1860_v58 = vshrl.u32 %v751_v61, 5  ;;  %v765_v60 = vshll.u32 %v2917_v43, %v1827_v21  ;;  %v766_v1 = vshrl.u32 %v2918_v14, %v1851_v35  ;;  %v2919_v2 = vmov 1326507024  }
  0x9e   :  { %v101_v22 = vshrl.u32 %v2919_v2, %v1811_v46  ;;  %vm103_vm12 = vcmp.lt.s32.totalorder %v1836_v20, 1  ;;  %v768_v59 = vshll.u32 %v2918_v14, %v1827_v21  ;;  %v769_v47 = vshrl.u32 %v2919_v2, %v1851_v35 }
  0x9f   :  { %v1873_v55 = vor.u32 %v89_v11, %v88_v56  ;;  %v1875_v61 = vor.u32 %v92_v48, %v91_v54  ;;  %vm105_vm13 = vcmp.lt.s32.totalorder %v1836_v20, 3  ;;  %vm106_vm14 = vcmp.lt.s32.totalorder %v1836_v20, 4 }
  0xa0   :  { %v1879_v34 = vor.u32 %v766_v1, %v765_v60  ;;  %v770_v10 = vor.u32 %v769_v47, %v768_v59  ;;  %v244_v6 = vor.u32 %v243_v23, %v242_v49  ;;  %v2920_v53 = vmov 2475754826  }
  0xa1   :  { %v245_v4 = vshll.u32 %v2920_v53, %v1698_v8  ;;  %v2921_v14 = vmov 2131351028   ;;  %v1885_v16 = vor.u32 %v98_v36, %v97_v28  ;;  %vm774_vm15 = vcmp.lt.s32.totalorder %v1860_v58, 4 }
  0xa2   :  { %v246_v18 = vshrl.u32 %v2921_v14, %v1719_v24  ;;  %v248_v54 = vshll.u32 %v2921_v14, %v1698_v8  ;;  %v249_v56 = vshrl.u32 %v2917_v43, %v1719_v24  ;;  %v1892_v60 = vor.u32 %v95_v31, %v94_v5 }
  0xa3   :  { %vm773_vm0 = vcmp.lt.s32.totalorder %v1860_v58, 3  ;;  %v784_v23 = vsel %vm774_vm15, %v770_v10, 1326507024  ;;  %vm257_vm1 = vcmp.lt.s32.totalorder %v1731_v39, 1  ;;  %vm259_vm2 = vcmp.lt.s32.totalorder %v1731_v39, 3 }
  0xa4   :  { %v247_v59 = vor.u32 %v246_v18, %v245_v4  ;;  %v1900_v28 = vsel %vm773_vm0, %v1879_v34, %v784_v23  ;;  %v250_v36 = vor.u32 %v249_v56, %v248_v54  ;;  %v102_v1 = vor.u32 %v101_v22, %v100_v32 }
  0xa5   :  { %v271_v5 = vsel %vm259_vm2, %v1764_v15, %v270_v9  ;;  %v2922_v4 = vor.u32 8388608, %v1729_v26  ;;  %v112_v10 = vsel %vm106_vm14, %v1885_v16, 920167782  ;;  %vm258_vm3 = vcmp.lt.s32.totalorder %v1731_v39, 2 }
  0xa6   :  { %v265_v31 = vsel %vm257_vm1, %v244_v6, %v247_v59  ;;  %v267_v32 = vsel %vm259_vm2, %v250_v36, %v1794_v57  ;;  %v269_v11 = vsel %vm257_vm1, %v247_v59, %v250_v36  ;;  %v1926_v18 = vsel %vm103_vm12, %v1873_v55, %v1875_v61 }
  0xa7   :  { %v1911_v8 = vshll.u32 %v2922_v4, 8  ;;  %v262_v22 = vsel %vm260_vm9, %v250_v36, 2102212464  ;;  %v268_v24 = vsel %vm258_vm3, %v265_v31, %v267_v32  ;;  %v272_v26 = vsel %vm258_vm3, %v269_v11, %v271_v5 }
  0xa8   :  { %v276_v15 = vand.u32 65535, %v272_v26  ;;  %v277_v57 = vshrl.u32 %v272_v26, 16  ;;  %v1939_v9 = vsel %vm105_vm13, %v1892_v60, %v112_v10  ;;  %v1945_v49 = vsel %vm103_vm12, %v1875_v61, %v1892_v60 }
  0xa9   :  { %v274_v48 = vand.u32 65535, %v1911_v8  ;;  %v275_v2 = vshrl.u32 %v1911_v8, 16  ;;  %v298_v47 = vand.u32 65535, %v268_v24  ;;  %v299_v54 = vshrl.u32 %v268_v24, 16 }
  0xaa   :  { %v1949_v56 = vsel %vm106_vm14, %v102_v1, 1326507024  ;;  %v261_v23 = vsel %vm257_vm1, %v1825_v41, %v244_v6  ;;  %v263_v5 = vsel %vm259_vm2, %v247_v59, %v262_v22  ;;  %v2883_v32 = vand.u32 2147483647, %v1659_v38 }
  0xab   :  { %v279_v36 = vmul.u32 %v277_v57, %v274_v48  ;;  %v280_v31 = vmul.u32 %v276_v15, %v275_v2  ;;  %v301_v4 = vmul.u32 %v299_v54, %v274_v48  ;;  %v302_v10 = vmul.u32 %v298_v47, %v275_v2 }
  0xac   :  { %v278_v11 = vmul.u32 %v276_v15, %v274_v48  ;;  %v281_v26 = vmul.u32 %v277_v57, %v275_v2  ;;  %v300_v52 = vmul.u32 %v298_v47, %v274_v48  ;;  %v303_v30 = vmul.u32 %v299_v54, %v275_v2 }
  0xad   :  { %v282_v24 = vshll.u32 %v279_v36, 16  ;;  %v283_v51 = vshrl.u32 %v279_v36, 16  ;;  %v284_v1 = vshll.u32 %v280_v31, 16  ;;  %v304_v62 = vshll.u32 %v301_v4, 16 }
  0xae   :  { %v285_v63 = vshrl.u32 %v280_v31, 16  ;;  %v306_v41 = vshll.u32 %v302_v10, 16  ;;  %v900_v22 = vand.u32 8388607, %v2883_v32  ;;  %v305_v15 = vshrl.u32 %v301_v4, 16 }
  0xaf   :  { %vm286_vm4 = vc.u32 %v278_v11, %v282_v24  ;;  %v288_v6 = vadd.s32 %v282_v24, %v278_v11  ;;  %vm308_vm6 = vc.u32 %v300_v52, %v304_v62  ;;  %v310_v59 = vadd.s32 %v304_v62, %v300_v52 }
  0xb0   :  { %v287_v17 = vsel %vm286_vm4, 1, %v2923_v19  ;;  %v309_v48 = vsel %vm308_vm6, 1, %v2923_v19  ;;  %v307_v2 = vshrl.u32 %v302_v10, 16  ;;  %v901_v31 = vor.u32 8388608, %v900_v22 }
  0xb1   :  { %v289_v7 = vadd.s32 %v287_v17, %v281_v26  ;;  %vm290_vm7 = vc.u32 %v288_v6, %v284_v1  ;;  %v311_v47 = vadd.s32 %v309_v48, %v303_v30  ;;  %vm312_vm8 = vc.u32 %v310_v59, %v306_v41 }
  0xb2   :  { %v291_v57 = vsel %vm290_vm7, 1, %v2923_v19  ;;  %v313_v36 = vsel %vm312_vm8, 1, %v2923_v19  ;;  %v2924_v11 = vmov 683565275   ;;  %v911_v17 = vshrl.u32 %v2920_v53, %v1734_v27 }
  0xb3   :  { %v293_v54 = vadd.s32 %v291_v57, %v289_v7  ;;  %v910_v52 = vshll.u32 %v2924_v11, %v1703_v12  ;;  %v315_v62 = vadd.s32 %v313_v36, %v311_v47  ;;  %v913_v4 = vshll.u32 %v2920_v53, %v1703_v12 }
  0xb4   :  { %v914_v26 = vshrl.u32 %v2921_v14, %v1734_v27  ;;  %v1971_v30 = vadd.s32 %v310_v59, %v306_v41  ;;  %v916_v7 = vshll.u32 %v2921_v14, %v1703_v12  ;;  %v917_v24 = vshrl.u32 %v2917_v43, %v1734_v27 }
  0xb5   :  { %v294_v10 = vadd.s32 %v293_v54, %v283_v51  ;;  %v316_v1 = vadd.s32 %v315_v62, %v305_v15  ;;  %v1977_v6 = vor.u32 %v911_v17, %v910_v52  ;;  %vm925_vm9 = vcmp.lt.s32.totalorder %v1736_v42, 1 }
  0xb6   :  { %v1979_v22 = vor.u32 %v914_v26, %v913_v4  ;;  %v918_v57 = vor.u32 %v917_v24, %v916_v7  ;;  %vm927_vm11 = vcmp.lt.s32.totalorder %v1736_v42, 3  ;;  %v1985_v51 = vshll.u32 %v901_v31, 8 }
  0xb7   :  { %v1982_v48 = vadd.s32 %v294_v10, %v285_v63  ;;  %v264_v12 = vsel %vm258_vm3, %v261_v23, %v263_v5  ;;  %v317_v41 = vadd.s32 %v316_v1, %v307_v2  ;;  %v939_v63 = vsel %vm927_vm11, %v1776_v44, %v1815_v13 }
  0xb8   :  { %v933_v59 = vsel %vm925_vm9, %v1977_v6, %v1979_v22  ;;  %v756_v15 = vshll.u32 %v2924_v11, %v1827_v21  ;;  %vm926_vm2 = vcmp.lt.s32.totalorder %v1736_v42, 2  ;;  %v935_v39 = vsel %vm927_vm11, %v918_v57, %v1809_v45 }
  0xb9   :  { %vm320_vm1 = vc.u32 %v1982_v48, %v1971_v30  ;;  %v757_v23 = vshrl.u32 %v2920_v53, %v1851_v35  ;;  %v321_v5 = vadd.s32 1, %v317_v41  ;;  %v936_v2 = vsel %vm926_vm2, %v933_v59, %v935_v39 }
  0xba   :  { %v937_v44 = vsel %vm925_vm9, %v1979_v22, %v918_v57  ;;  %v318_v13 = vmul.u32 %v1911_v8, %v264_v12  ;;  %v942_v54 = vand.u32 65535, %v1985_v51  ;;  %v943_v45 = vshrl.u32 %v1985_v51, 16 }
  0xbb   :  { %v940_v47 = vsel %vm926_vm2, %v937_v44, %v939_v63  ;;  %v322_v36 = vsel %vm320_vm1, %v321_v5, %v317_v41  ;;  %v966_v62 = vand.u32 65535, %v936_v2  ;;  %v117_v17 = vsel %vm105_vm13, %v1885_v16, %v1949_v56 }
  0xbc   :  { %v944_v31 = vand.u32 65535, %v940_v47  ;;  %v945_v52 = vshrl.u32 %v940_v47, 16  ;;  %v759_v4 = vshll.u32 %v2920_v53, %v1827_v21  ;;  %v323_v8 = vadd.s32 %v322_v36, %v318_v13 }
  0xbd   :  { %v967_v26 = vshrl.u32 %v936_v2, 16  ;;  %v760_v10 = vshrl.u32 %v2921_v14, %v1851_v35  ;;  %v763_v7 = vshrl.u32 %v2917_v43, %v1851_v35  ;;  %v2027_v12 = vor.u32 %v757_v23, %v756_v15 }
  0xbe   :  { %v947_v24 = vmul.u32 %v945_v52, %v942_v54  ;;  %v948_v1 = vmul.u32 %v944_v31, %v943_v45  ;;  %v324_v41 = vadd.s32 536870912, %v323_v8  ;;  %v970_v63 = vmul.u32 %v966_v62, %v943_v45 }
  0xbf   :  { %v969_v59 = vmul.u32 %v967_v26, %v942_v54  ;;  %v909_v16 = vshrl.u32 %v2924_v11, %v1734_v27  ;;  %v930_v56 = vsel %vm928_vm10, %v918_v57, 2102212464  ;;  %v946_v39 = vmul.u32 %v944_v31, %v942_v54 }
  0xc0   :  { %v950_v5 = vshll.u32 %v947_v24, 16  ;;  %v2033_v2 = vshrl.u32 %v324_v41, 30  ;;  %v949_v44 = vmul.u32 %v945_v52, %v943_v45  ;;  %v968_v13 = vmul.u32 %v966_v62, %v942_v54 }
  0xc1   :  { %v972_v47 = vshll.u32 %v969_v59, 16  ;;  %v952_v36 = vshll.u32 %v948_v1, 16  ;;  %v971_v23 = vmul.u32 %v967_v26, %v943_v45  ;;  %v974_v53 = vshll.u32 %v970_v63, 16 }
  0xc2   :  { %vm954_vm3 = vc.u32 %v946_v39, %v950_v5  ;;  %v956_v15 = vadd.s32 %v950_v5, %v946_v39  ;;  %v326_v32 = vshll.u32 %v2033_v2, 30  ;;  %v2038_v41 = vor.u32 %v760_v10, %v759_v4 }
  0xc3   :  { %v955_v43 = vsel %vm954_vm3, 1, %v2923_v19  ;;  %vm976_vm4 = vc.u32 %v968_v13, %v972_v47  ;;  %v978_v31 = vadd.s32 %v972_v47, %v968_v13  ;;  %v929_v45 = vsel %vm925_vm9, %v909_v16, %v1977_v6 }
  0xc4   :  { %v957_v27 = vadd.s32 %v955_v43, %v949_v44  ;;  %vm958_vm6 = vc.u32 %v956_v15, %v952_v36  ;;  %v977_v57 = vsel %vm976_vm4, 1, %v2923_v19  ;;  %v327_v52 = vsub.s32 %v323_v8, %v326_v32 }
  0xc5   :  { %v959_v54 = vsel %vm958_vm6, 1, %v2923_v19  ;;  %v979_v62 = vadd.s32 %v977_v57, %v971_v23  ;;  %v951_v26 = vshrl.u32 %v947_v24, 16  ;;  %vm980_vm10 = vc.u32 %v978_v31, %v974_v53 }
  0xc6   :  { %v961_v39 = vadd.s32 %v959_v54, %v957_v27  ;;  %vm328_vm7 = vcmp.lt.s32.totalorder %v327_v52, 0  ;;  %v329_v5 = vsub.s32 0, %v327_v52  ;;  %v931_v43 = vsel %vm927_vm11, %v1979_v22, %v930_v56 }
  0xc7   :  { %v981_v4 = vsel %vm980_vm10, 1, %v2923_v19  ;;  %v953_v10 = vshrl.u32 %v948_v1, 16  ;;  %v973_v8 = vshrl.u32 %v969_v59, 16  ;;  %v762_v13 = vshll.u32 %v2921_v14, %v1827_v21 }
  0xc8   :  { %v962_v32 = vadd.s32 %v961_v39, %v951_v26  ;;  %v983_v44 = vadd.s32 %v981_v4, %v979_v62  ;;  %vm771_vm8 = vcmp.lt.s32.totalorder %v1860_v58, 1  ;;  %v330_v6 = vsel %vm328_vm7, %v329_v5, %v327_v52 }
  0xc9   :  { %v975_v24 = vshrl.u32 %v970_v63, 16  ;;  %v331_v16 = vclz %v330_v6  ;;  %vm104_vm9 = vcmp.lt.s32.totalorder %v1836_v20, 2  ;;  %v2054_v22 = vor.u32 %v763_v7, %v762_v13 }
  0xca   :  { %v2051_v47 = vadd.s32 %v962_v32, %v953_v10  ;;  %v984_v36 = vadd.s32 %v983_v44, %v973_v8  ;;  %v932_v1 = vsel %vm926_vm2, %v929_v45, %v931_v43  ;;  %v2058_v59 = vadd.s32 %v978_v31, %v974_v53 }
  0xcb   :  { %v118_v21 = vsel %vm104_vm9, %v1945_v49, %v117_v17  ;;  %v2067_v63 = vsel %vm771_vm8, %v2027_v12, %v2038_v41  ;;  %v780_v7 = vsel %vm774_vm15, %v1879_v34, 920167782  ;;  %v1469_v56 = vadd.s32 4294967294, %v331_v16 }
  0xcc   :  { %v985_v15 = vadd.s32 %v984_v36, %v975_v24  ;;  %vm988_vm11 = vc.u32 %v2051_v47, %v2058_v59  ;;  %v114_v42 = vsel %vm104_vm9, %v1926_v18, %v1939_v9  ;;  %v122_v53 = vand.u32 65535, %v118_v21 }
  0xcd   :  { %v123_v49 = vshrl.u32 %v118_v21, 16  ;;  %v319_v17 = vadd.s32 %v1971_v30, %v1982_v48  ;;  %vm1470_vm1 = vcmp.lt.s32.totalorder %v1469_v56, 0  ;;  %v986_v23 = vmul.u32 %v1985_v51, %v932_v1 }
  0xce   :  { %v989_v27 = vadd.s32 1, %v985_v15  ;;  %vm227_vm2 = vcmp.lt.s32.totalorder %v1657_v37, 0  ;;  %v334_v34 = vsel %vm1470_vm1, 0, %v1469_v56  ;;  %v349_v57 = vsub.s32 4, %v2033_v2 }
  0xcf   :  { %v125_v31 = vmul.u32 %v123_v49, %v1818_v40  ;;  %v2085_v54 = vmul.u32 %v122_v53, %v1821_v33  ;;  %v335_v18 = vsub.s32 32, %v334_v34  ;;  %v339_v9 = vsub.s32 4294967266, %v334_v34 }
  0xd0   :  { %v990_v62 = vsel %vm988_vm11, %v989_v27, %v985_v15  ;;  %v145_v45 = vshrl.u32 %v114_v42, 16  ;;  %v124_v30 = vmul.u32 %v122_v53, %v1818_v40  ;;  %v144_v51 = vand.u32 65535, %v114_v42 }
  0xd1   :  { %v991_v26 = vadd.s32 %v990_v62, %v986_v23  ;;  %v128_v48 = vshll.u32 %v125_v31, 16  ;;  %v336_v39 = vshll.u32 %v327_v52, %v334_v34  ;;  %v337_v5 = vshrl.u32 %v319_v17, %v335_v18 }
  0xd2   :  { %v340_v43 = vadd.s32 127, %v339_v9  ;;  %v127_v4 = vmul.u32 %v123_v49, %v1821_v33  ;;  %v2925_v10 = vand.u32 2147483647, %v1657_v37  ;;  %v130_v44 = vshll.u32 %v2085_v54, 16 }
  0xd3   :  { %v992_v8 = vadd.s32 536870912, %v991_v26  ;;  %vm132_vm4 = vc.u32 %v124_v30, %v128_v48  ;;  %v134_v13 = vadd.s32 %v128_v48, %v124_v30  ;;  %v338_v6 = vor.u32 %v337_v5, %v336_v39 }
  0xd4   :  { %vm2091_vm3 = vcmp.le.f32.partialorder %v2925_v10, 0.7853982  ;;  %v341_v24 = vshll.u32 %v340_v43, 23  ;;  %v133_v16 = vsel %vm132_vm4, 1, %v2923_v19  ;;  %v147_v52 = vmul.u32 %v145_v45, %v1818_v40 }
  0xd5   :  { %v2102_v36 = vsel %vm771_vm8, %v2038_v41, %v2054_v22  ;;  %v993_v1 = vshrl.u32 %v992_v8, 30  ;;  %v135_v21 = vadd.s32 %v133_v16, %v127_v4  ;;  %vm136_vm6 = vc.u32 %v134_v13, %v130_v44 }
  0xd6   :  { %v2107_v56 = vsel %vm773_vm0, %v2054_v22, %v780_v7  ;;  %v342_v15 = vor.u32 4788187, %v341_v24  ;;  %v137_v42 = vsel %vm136_vm6, 1, %v2923_v19  ;;  %v148_v53 = vmul.u32 %v144_v51, %v1821_v33 }
  0xd7   :  { %v994_v49 = vshll.u32 %v993_v1, 30  ;;  %v139_v17 = vadd.s32 %v137_v42, %v135_v21  ;;  %v146_v23 = vmul.u32 %v144_v51, %v1818_v40  ;;  %v150_v27 = vshll.u32 %v147_v52, 16 }
  0xd8   :  { %v343_v34 = vand.u32 2147483647, %v342_v15  ;;  %v345_v18 = vcvt.s32.f32 %v338_v6  ;;  %v350_v9 = vsel %vm227_vm2, %v349_v57, %v2033_v2  ;;  %v108_v7 = vsel %vm106_vm14, %v1892_v60, 2102212464 }
  0xd9   :  { %vm895_vm10 = vcmp.lt.s32.totalorder %v1659_v38, 0  ;;  %v2119_v62 = vsub.s32 %v991_v26, %v994_v49  ;;  %v129_v30 = vshrl.u32 %v125_v31, 16  ;;  %v149_v48 = vmul.u32 %v145_v45, %v1821_v33 }
  0xda   :  { %vm154_vm7 = vc.u32 %v146_v23, %v150_v27  ;;  %v346_v40 = vmul.f32 %v345_v18, %v343_v34  ;;  %v152_v51 = vshll.u32 %v148_v53, 16  ;;  %v156_v5 = vadd.s32 %v150_v27, %v146_v23 }
  0xdb   :  { %v155_v39 = vsel %vm154_vm7, 1, %v2923_v19  ;;  %vm996_vm11 = vcmp.lt.s32.totalorder %v2119_v62, 0  ;;  %v997_v2 = vsub.s32 0, %v2119_v62  ;;  %v87_v60 = vshrl.u32 %v2924_v11, %v1811_v46 }
  0xdc   :  { %v140_v57 = vadd.s32 %v139_v17, %v129_v30  ;;  %v347_v43 = vxor.u32 2147483648, %v346_v40  ;;  %v352_v31 = vsel %vm2091_vm3, 0, %v350_v9  ;;  %v157_v26 = vadd.s32 %v155_v39, %v149_v48 }
  0xdd   :  { %vm158_vm14 = vc.u32 %v156_v5, %v152_v51  ;;  %v998_v33 = vsel %vm996_vm11, %v997_v2, %v2119_v62  ;;  %v107_v45 = vsel %vm103_vm12, %v87_v60, %v1873_v55  ;;  %v109_v4 = vsel %vm105_vm13, %v1875_v61, %v108_v7 }
  0xde   :  { %v131_v10 = vshrl.u32 %v2085_v54, 16  ;;  %v348_v46 = vsel %vm227_vm2, %v347_v43, %v346_v40  ;;  %v2928_v8 = vand.u32 2147483647, %v1659_v38  ;;  %v999_v13 = vclz %v998_v33 }
  0xdf   :  { %v1017_v6 = vsub.s32 4, %v993_v1  ;;  %v159_v24 = vsel %vm158_vm14, 1, %v2923_v19  ;;  %v2149_v55 = vsel %vm2091_vm3, %v1657_v37, %v348_v46  ;;  %v151_v54 = vshrl.u32 %v147_v52, 16 }
  0xe0   :  { %vm2141_vm1 = vcmp.le.f32.partialorder %v2928_v8, 0.7853982  ;;  %v2151_v61 = vadd.s32 %v140_v57, %v131_v10  ;;  %v161_v16 = vadd.s32 %v159_v24, %v157_v26  ;;  %v353_v21 = vmul.f32 %v2149_v55, %v2149_v55 }
  0xe1   :  { %v2155_v15 = vand.u32 3, %v352_v31  ;;  %v1481_v42 = vadd.s32 4294967294, %v999_v13  ;;  %v110_v49 = vsel %vm104_vm9, %v107_v45, %v109_v4  ;;  %v987_v17 = vadd.s32 %v2058_v59, %v2051_v47 }
  0xe2   :  { %v153_v23 = vshrl.u32 %v148_v53, 16  ;;  %v160_v32 = vadd.s32 %v156_v5, %v152_v51  ;;  %v162_v27 = vadd.s32 %v161_v16, %v151_v54  ;;  %v354_v34 = vmul.f32 -0.001358992, %v353_v21 }
  0xe3   :  { %v361_v18 = vmul.f32 -0.00019511016, %v353_v21  ;;  %vm1482_vm12 = vcmp.lt.s32.totalorder %v1481_v42, 0  ;;  %v1018_v52 = vsel %vm895_vm10, %v1017_v6, %v993_v1  ;;  %v164_v30 = vmul.u32 %v1785_v50, %v110_v49 }
  0xe4   :  { %v1002_v9 = vsel %vm1482_vm12, 0, %v1481_v42  ;;  %v163_v7 = vadd.s32 %v162_v27, %v153_v23  ;;  %vm166_vm13 = vc.u32 %v2151_v61, %v160_v32  ;;  %v355_v20 = vadd.f32 0.041655596, %v354_v34 }
  0xe5   :  { %v362_v48 = vadd.f32 0.008332121, %v361_v18  ;;  %v1003_v40 = vsub.s32 32, %v1002_v9  ;;  %vm772_vm9 = vcmp.lt.s32.totalorder %v1860_v58, 2  ;;  %v1004_v47 = vshll.u32 %v2119_v62, %v1002_v9 }
  0xe6   :  { %v1007_v59 = vsub.s32 4294967266, %v1002_v9  ;;  %v167_v53 = vadd.s32 1, %v163_v7  ;;  %v786_v1 = vsel %vm772_vm9, %v2102_v36, %v1900_v28  ;;  %v356_v51 = vmul.f32 %v355_v20, %v353_v21 }
  0xe7   :  { %v363_v39 = vmul.f32 %v362_v48, %v353_v21  ;;  %v1005_v5 = vshrl.u32 %v987_v17, %v1003_v40  ;;  %v790_v50 = vand.u32 65535, %v786_v1  ;;  %v1020_v60 = vsel %vm2141_vm1, 0, %v1018_v52 }
  0xe8   :  { %v1008_v2 = vadd.s32 127, %v1007_v59  ;;  %v168_v57 = vsel %vm166_vm13, %v167_v53, %v163_v7  ;;  %v791_v43 = vshrl.u32 %v786_v1, 16  ;;  %v357_v31 = vadd.f32 -0.4999988, %v356_v51 }
  0xe9   :  { %v364_v26 = vadd.f32 -0.16666654, %v363_v39  ;;  %v1006_v62 = vor.u32 %v1005_v5, %v1004_v47  ;;  %v169_v33 = vadd.s32 %v168_v57, %v164_v30  ;;  %vm371_vm2 = vcmp.eq.s32.totalorder %v2155_v15, 0 }
  0xea   :  { %vm374_vm3 = vcmp.eq.s32.totalorder %v2155_v15, 2  ;;  %v1009_v45 = vshll.u32 %v1008_v2, 23  ;;  %v793_v28 = vmul.u32 %v791_v43, %v1840_v25  ;;  %v2177_v36 = vmul.u32 %v790_v50, %v1843_v29 }
  0xeb   :  { %v358_v4 = vmul.f32 %v357_v31, %v353_v21  ;;  %v365_v10 = vmul.f32 %v364_v26, %v353_v21  ;;  %vm370_vm4 = vcmp.lt.s32.totalorder %v2155_v15, 2  ;;  %v2180_v46 = vand.u32 3, %v1020_v60 }
  0xec   :  { %v170_v8 = vadd.s32 536870912, %v169_v33  ;;  %vm368_vm6 = vweird.f32 %v1657_v37  ;;  %v1010_v13 = vor.u32 4788187, %v1009_v45  ;;  %v782_v6 = vsel %vm772_vm9, %v2067_v63, %v2107_v56 }
  0xed   :  { %v792_v24 = vmul.u32 %v790_v50, %v1840_v25  ;;  %v796_v54 = vshll.u32 %v793_v28, 16  ;;  %v359_v16 = vadd.f32 1.0, %v358_v4  ;;  %v366_v42 = vadd.f32 1.0, %v365_v10 }
  0xee   :  { %v1013_v49 = vcvt.s32.f32 %v1006_v62  ;;  %v2188_v21 = vshrl.u32 %v170_v8, 30  ;;  %v1011_v17 = vand.u32 2147483647, %v1010_v13  ;;  %v798_v23 = vshll.u32 %v2177_v36, 16 }
  0xef   :  { %vm800_vm7 = vc.u32 %v792_v24, %v796_v54  ;;  %v802_v27 = vadd.s32 %v796_v54, %v792_v24  ;;  %v367_v34 = vmul.f32 %v366_v42, %v2149_v55  ;;  %v375_v18 = vxor.u32 2147483648, %v359_v16 }
  0xf0   :  { %v2193_v52 = vadd.s32 %v160_v32, %v2151_v61  ;;  %v172_v63 = vshll.u32 %v2188_v21, 30  ;;  %v1014_v56 = vmul.f32 %v1013_v49, %v1011_v17  ;;  %v795_v9 = vmul.u32 %v791_v43, %v1843_v29 }
  0xf1   :  { %v801_v7 = vsel %vm800_vm7, 1, %v2923_v19  ;;  %vm804_vm11 = vc.u32 %v802_v27, %v798_v23  ;;  %v372_v30 = vxor.u32 2147483648, %v367_v34  ;;  %v776_v48 = vsel %vm774_vm15, %v2054_v22, 2102212464 }
  0xf2   :  { %v2198_v20 = vsub.s32 %v169_v33, %v172_v63  ;;  %v812_v55 = vand.u32 65535, %v782_v6  ;;  %v1015_v40 = vxor.u32 2147483648, %v1014_v56  ;;  %v803_v47 = vadd.s32 %v801_v7, %v795_v9 }
  0xf3   :  { %v805_v61 = vsel %vm804_vm11, 1, %v2923_v19  ;;  %v813_v32 = vshrl.u32 %v782_v6, 16  ;;  %v373_v59 = vsel %vm371_vm2, %v359_v16, %v372_v30  ;;  %v376_v53 = vsel %vm374_vm3, %v375_v18, %v367_v34 }
  0xf4   :  { %vm174_vm14 = vcmp.lt.s32.totalorder %v2198_v20, 0  ;;  %v175_v1 = vsub.s32 0, %v2198_v20  ;;  %v377_v51 = vsel %vm370_vm4, %v373_v59, %v376_v53  ;;  %v1016_v22 = vsel %vm895_vm10, %v1015_v40, %v1014_v56 }
  0xf5   :  { %v755_v39 = vshrl.u32 %v2924_v11, %v1851_v35  ;;  %v807_v5 = vadd.s32 %v805_v61, %v803_v47  ;;  %v378_v50 = vsel %vm368_vm6, nan, %v377_v51  ;;  %v2221_v2 = vsel %vm2141_vm1, %v1659_v38, %v1016_v22 }
  0xf6   :  { %v176_v60 = vsel %vm174_vm14, %v175_v1, %v2198_v20  ;;  %v797_v57 = vshrl.u32 %v793_v28, 16  ;;  %v380_v15 = vmul.f32 %v1830_v0, %v378_v50  ;;  %v1021_v43 = vmul.f32 %v2221_v2, %v2221_v2  ;;  %v2931_v1 = vld [vmem:[#allocation9_spill] sm:$0xff] }
  0xf7   :  { %v177_v31 = vclz %v176_v60  ;;  %v777_v35 = vsel %vm773_vm0, %v2038_v41, %v776_v48  ;;  %v775_v37 = vsel %vm771_vm8, %v755_v39, %v2027_v12  ;;  %v815_v26 = vmul.u32 %v813_v32, %v1840_v25 }
  0xf8   :  { %v808_v44 = vadd.s32 %v807_v5, %v797_v57  ;;  %v816_v62 = vmul.u32 %v812_v55, %v1843_v29  ;;  %719 = vmatpush.xpose.msra.mxu0 %v380_v15  ;;  %1489 = vmatpush.xpose.msra.mxu2 %v380_v15  ;;  %v1022_v33 = vmul.f32 -0.001358992, %v1021_v43  ;;  %v1029_v45 = vmul.f32 -0.00019511016, %v1021_v43 }
  0xf9   :  { %v1466_v28 = vadd.s32 4294967294, %v177_v31  ;;  %v799_v4 = vshrl.u32 %v2177_v36, 16  ;;  %v195_v10 = vsub.s32 4, %v2188_v21  ;;  %v814_v41 = vmul.u32 %v812_v55, %v1840_v25  ;;  %v2935_v31 = vld [vmem:[#allocation11_spill] sm:$0xff] }
  0xfa   :  { %v817_v8 = vmul.u32 %v813_v32, %v1843_v29  ;;  %v818_v13 = vshll.u32 %v815_v26, 16  ;;  %vm73_vm15 = vcmp.lt.s32.totalorder %v1691_v3, 0  ;;  %v1023_v12 = vadd.f32 0.041655596, %v1022_v33  ;;  %v2936_v33 = vld [vmem:[#allocation12_spill] sm:$0xff] }
  0xfb   :  { %v1030_v6 = vadd.f32 0.008332121, %v1029_v45  ;;  %vm1467_vm0 = vcmp.lt.s32.totalorder %v1466_v28, 0  ;;  %v809_v24 = vadd.s32 %v808_v44, %v799_v4  ;;  %v820_v16 = vshll.u32 %v816_v62, 16 }
  0xfc   :  { %v180_v54 = vsel %vm1467_vm0, 0, %v1466_v28  ;;  %vm822_vm8 = vc.u32 %v814_v41, %v818_v13  ;;  %v824_v42 = vadd.s32 %v818_v13, %v814_v41  ;;  %v1024_v49 = vmul.f32 %v1023_v12, %v1021_v43 }
  0xfd   :  { %v1031_v17 = vmul.f32 %v1030_v6, %v1021_v43  ;;  %v181_v36 = vsub.s32 32, %v180_v54  ;;  %v182_v23 = vshll.u32 %v2198_v20, %v180_v54  ;;  %v185_v27 = vsub.s32 4294967266, %v180_v54 }
  0xfe   :  { %v823_v25 = vsel %vm822_vm8, 1, %v2923_v19  ;;  %vm826_vm10 = vc.u32 %v824_v42, %v820_v16  ;;  %v828_v29 = vadd.s32 %v824_v42, %v820_v16  ;;  %v1025_v34 = vadd.f32 -0.4999988, %v1024_v49 }
  0xff   :  { %v1032_v18 = vadd.f32 -0.16666654, %v1031_v17  ;;  %v183_v63 = vshrl.u32 %v2193_v52, %v181_v36  ;;  %v825_v56 = vadd.s32 %v823_v25, %v817_v8  ;;  %v186_v9 = vadd.s32 127, %v185_v27 }
 0x100   :  { %v827_v7 = vsel %vm826_vm10, 1, %v2923_v19  ;;  %v2244_v30 = vadd.s32 %v828_v29, %v809_v24  ;;  %vm834_vm1 = vc.u32 %v809_v24, %v828_v29  ;;  %v1026_v48 = vmul.f32 %v1025_v34, %v1021_v43 }
 0x101   :  { %v1033_v55 = vmul.f32 %v1032_v18, %v1021_v43  ;;  %vm1038_vm12 = vcmp.lt.s32.totalorder %v2180_v46, 2  ;;  %v819_v20 = vshrl.u32 %v815_v26, 16  ;;  %v829_v40 = vadd.s32 %v827_v7, %v825_v56  ;;  %v2940_v18 = vld [vmem:[#allocation23_spill] sm:$0xff]  ;;  %v2942_v56 = vld [vmem:[#allocation36_spill] sm:$0xff]  ;;  %v2943_v7 = vld [vmem:[#allocation18_spill] sm:$0xff] }
 0x102   :  { %vm1036_vm13 = vweird.f32 %v1659_v38  ;;  %vm1039_vm2 = vcmp.eq.s32.totalorder %v2180_v46, 0  ;;  %v184_v47 = vor.u32 %v183_v63, %v182_v23  ;;  %v187_v61 = vshll.u32 %v186_v9, 23 }
 0x103   :  { %v821_v52 = vshrl.u32 %v816_v62, 16  ;;  %v1027_v32 = vadd.f32 1.0, %v1026_v48  ;;  %v1034_v59 = vadd.f32 1.0, %v1033_v55  ;;  %v830_v53 = vadd.s32 %v829_v40, %v819_v20 }
 0x104   :  { %v397_v51 = vand.u32 2147483647, %v2931_v1  ;;  %vm1042_vm3 = vcmp.eq.s32.totalorder %v2180_v46, 2  ;;  %v2932_v22 = vand.u32 2147483647, %v1691_v3  ;;  %v196_v50 = vsel %vm73_vm15, %v195_v10, %v2188_v21  ;;  %v2941_v46 = vld [vmem:[#allocation30_spill] sm:$0xff] }
 0x105   :  { %v188_v5 = vor.u32 4788187, %v187_v61  ;;  %v778_v60 = vsel %vm772_vm9, %v775_v37, %v777_v35  ;;  %v1035_v57 = vmul.f32 %v1034_v59, %v2221_v2  ;;  %v1043_v15 = vxor.u32 2147483648, %v1027_v32  ;;  %v2938_v37 = vld [vmem:[#allocation38_spill] sm:$0xff]  ;;  %v2944_v61 = vld [vmem:[#allocation27_spill] sm:$0xff]  ;;  %v2945_v59 = vld [vmem:[#allocation28_spill] sm:$0xff] }
 0x106   :  { %vm2253_vm4 = vcmp.le.f32.partialorder %v2932_v22, 0.7853982  ;;  %v831_v43 = vadd.s32 %v830_v53, %v821_v52  ;;  %v414_v44 = vshll.u32 %v2924_v11, %v2935_v31  ;;  %v191_v62 = vcvt.s32.f32 %v184_v47  ;;  %v2946_v53 = vld [vmem:[#allocation25_spill] sm:$0xff] }
 0x107   :  { %v189_v26 = vand.u32 2147483647, %v188_v5  ;;  %v2937_v45 = vmov 2475754826   ;;  %v1040_v41 = vxor.u32 2147483648, %v1035_v57  ;;  %v418_v2 = vshrl.u32 %v2921_v14, %v2936_v33  ;;  %v2947_v5 = vld [vmem:[#allocation37_spill] sm:$0xff] }
 0x108   :  { %v415_v28 = vshrl.u32 %v2937_v45, %v2936_v33  ;;  %v417_v4 = vshll.u32 %v2937_v45, %v2935_v31  ;;  %v835_v21 = vadd.s32 1, %v831_v43  ;;  %v404_v58 = vand.u32 8388607, %v397_v51 }
 0x109   :  { %v192_v35 = vmul.f32 %v191_v62, %v189_v26  ;;  %v832_v10 = vmul.u32 %v2938_v37, %v778_v60  ;;  %v420_v8 = vshll.u32 %v2921_v14, %v2935_v31  ;;  %v2939_v13 = vmov 2102212464  }
 0x10a   :  { %v421_v12 = vshrl.u32 %v2939_v13, %v2936_v33  ;;  %v1041_v6 = vsel %vm1039_vm2, %v1027_v32, %v1040_v41  ;;  %v1044_v54 = vsel %vm1042_vm3, %v1043_v15, %v1035_v57  ;;  %v836_v16 = vsel %vm834_vm1, %v835_v21, %v831_v43 }
 0x10b   :  { %v416_v42 = vor.u32 %v415_v28, %v414_v44  ;;  %v1045_v49 = vsel %vm1038_vm12, %v1041_v6, %v1044_v54  ;;  %v193_v17 = vxor.u32 2147483648, %v192_v35  ;;  %v837_v36 = vadd.s32 %v836_v16, %v832_v10 }
 0x10c   :  { %v419_v23 = vor.u32 %v418_v2, %v417_v4  ;;  %v1046_v27 = vsel %vm1036_vm13, nan, %v1045_v49  ;;  %v405_v25 = vor.u32 8388608, %v404_v58  ;;  %v422_v34 = vor.u32 %v421_v12, %v420_v8 }
 0x10d   :  { %vm429_vm9 = vcmp.lt.s32.totalorder %v2940_v18, 1  ;;  %v1048_v63 = vmul.f32 %v1830_v0, %v1046_v27  ;;  %v194_v24 = vsel %vm73_vm15, %v193_v17, %v192_v35  ;;  %v838_v29 = vadd.s32 536870912, %v837_v36 }
 0x10e   :  { %vm431_vm6 = vcmp.lt.s32.totalorder %v2940_v18, 3  ;;  %v2294_v9 = vor.u32 %v2942_v56, %v2941_v46  ;;  %v2297_v48 = vshrl.u32 %v2943_v7, 5  ;;  %v2302_v38 = vsel %vm2253_vm4, %v1691_v3, %v194_v24 }
 0x10f   :  { %v198_v55 = vsel %vm2253_vm4, 0, %v196_v50  ;;  %1387 = vmatpush.xpose.msra.mxu1 %v1048_v63  ;;  %1491 = vmatpush.xpose.msra.mxu3 %v1048_v63  ;;  %v199_v20 = vmul.f32 %v2302_v38, %v2302_v38  ;;  %v2308_v40 = vshrl.u32 %v838_v29, 30  ;;  %vm430_vm7 = vcmp.lt.s32.totalorder %v2940_v18, 2  ;;  %v2948_v50 = vld [vmem:[#allocation39_spill] sm:$0xff] }
 0x110   :  { %v437_v47 = vsel %vm429_vm9, %v416_v42, %v419_v23  ;;  %v439_v52 = vsel %vm431_vm6, %v422_v34, %v2944_v61  ;;  %v441_v32 = vsel %vm429_vm9, %v419_v23, %v422_v34  ;;  %v443_v22 = vsel %vm431_vm6, %v2946_v53, %v2945_v59 }
 0x111   :  { %v2322_v39 = vshll.u32 %v405_v25, 8  ;;  %v2326_v60 = vor.u32 %v2948_v50, %v2947_v5  ;;  %v200_v57 = vmul.f32 -0.001358992, %v199_v20  ;;  %v207_v15 = vmul.f32 -0.00019511016, %v199_v20 }
 0x112   :  { %v840_v43 = vshll.u32 %v2308_v40, 30  ;;  %v2329_v31 = vand.u32 3, %v198_v55  ;;  %v444_v44 = vsel %vm430_vm7, %v441_v32, %v443_v22  ;;  %v440_v21 = vsel %vm430_vm7, %v437_v47, %v439_v52 }
 0x113   :  { %v446_v26 = vand.u32 65535, %v2322_v39  ;;  %v447_v62 = vshrl.u32 %v2322_v39, 16  ;;  %v201_v28 = vadd.f32 0.041655596, %v200_v57  ;;  %v208_v4 = vadd.f32 0.008332121, %v207_v15 }
 0x114   :  { %v2335_v41 = vsub.s32 %v837_v36, %v840_v43  ;;  %v413_v58 = vshrl.u32 %v2924_v11, %v2936_v33  ;;  %v434_v2 = vsel %vm432_vm5, %v422_v34, 2102212464  ;;  %v448_v35 = vand.u32 65535, %v444_v44 }
 0x115   :  { %v449_v37 = vshrl.u32 %v444_v44, 16  ;;  %v202_v10 = vmul.f32 %v201_v28, %v199_v20  ;;  %v209_v8 = vmul.f32 %v208_v4, %v199_v20  ;;  %v470_v16 = vand.u32 65535, %v440_v21  ;;  %v2949_v44 = vld [vmem:[#allocation26_spill] sm:$0xff] }
 0x116   :  { %vm842_vm11 = vcmp.lt.s32.totalorder %v2335_v41, 0  ;;  %v843_v12 = vsub.s32 0, %v2335_v41  ;;  %v2345_v54 = vmul.u32 %v448_v35, %v447_v62  ;;  %v471_v49 = vshrl.u32 %v440_v21, 16 }
 0x117   :  { %v451_v6 = vmul.u32 %v449_v37, %v446_v26  ;;  %v203_v17 = vadd.f32 -0.4999988, %v202_v10  ;;  %v210_v36 = vadd.f32 -0.16666654, %v209_v8  ;;  %v450_v27 = vmul.u32 %v448_v35, %v446_v26 }
 0x118   :  { %v844_v33 = vsel %vm842_vm11, %v843_v12, %v2335_v41  ;;  %vm217_vm5 = vcmp.eq.s32.totalorder %v2329_v31, 0  ;;  %vm220_vm14 = vcmp.eq.s32.totalorder %v2329_v31, 2  ;;  %v433_v34 = vsel %vm429_vm9, %v413_v58, %v416_v42 }
 0x119   :  { %v845_v25 = vclz %v844_v33  ;;  %v435_v63 = vsel %vm431_vm6, %v419_v23, %v434_v2  ;;  %v204_v24 = vmul.f32 %v203_v17, %v199_v20  ;;  %v211_v29 = vmul.f32 %v210_v36, %v199_v20 }
 0x11a   :  { %vm216_vm15 = vcmp.lt.s32.totalorder %v2329_v31, 2  ;;  %v453_v46 = vmul.u32 %v449_v37, %v447_v62  ;;  %v454_v56 = vshll.u32 %v451_v6, 16  ;;  %vm214_vm0 = vweird.f32 %v1691_v3 }
 0x11b   :  { %v1478_v7 = vadd.s32 4294967294, %v845_v25  ;;  %v456_v55 = vshll.u32 %v2345_v54, 16  ;;  %v472_v47 = vmul.u32 %v470_v16, %v446_v26  ;;  %v473_v61 = vmul.u32 %v471_v49, %v446_v26 }
 0x11c   :  { %v205_v52 = vadd.f32 1.0, %v204_v24  ;;  %v212_v32 = vadd.f32 1.0, %v211_v29  ;;  %vm458_vm8 = vc.u32 %v450_v27, %v454_v56  ;;  %v460_v42 = vadd.s32 %v454_v56, %v450_v27 }
 0x11d   :  { %vm1479_vm10 = vcmp.lt.s32.totalorder %v1478_v7, 0  ;;  %v455_v59 = vshrl.u32 %v451_v6, 16  ;;  %v459_v23 = vsel %vm458_vm8, 1, %v2923_v19  ;;  %v2358_v20 = vmul.u32 %v470_v16, %v447_v62 }
 0x11e   :  { %v213_v53 = vmul.f32 %v212_v32, %v2302_v38  ;;  %v221_v22 = vxor.u32 2147483648, %v205_v52  ;;  %v848_v5 = vsel %vm1479_vm10, 0, %v1478_v7  ;;  %v461_v50 = vadd.s32 %v459_v23, %v453_v46 }
 0x11f   :  { %v849_v57 = vsub.s32 32, %v848_v5  ;;  %v853_v15 = vsub.s32 4294967266, %v848_v5  ;;  %v457_v43 = vshrl.u32 %v2345_v54, 16  ;;  %vm462_vm1 = vc.u32 %v460_v42, %v456_v55 }
 0x120   :  { %vm586_vm12 = vcmp.lt.s32.totalorder %v2297_v48, 4  ;;  %vm741_vm13 = vcmp.lt.s32.totalorder %v2949_v44, 0  ;;  %v218_v26 = vxor.u32 2147483648, %v213_v53  ;;  %v463_v28 = vsel %vm462_vm1, 1, %v2923_v19 }
 0x121   :  { %v475_v4 = vmul.u32 %v471_v49, %v447_v62  ;;  %v476_v21 = vshll.u32 %v473_v61, 16  ;;  %v850_v58 = vshll.u32 %v2335_v41, %v848_v5  ;;  %v851_v38 = vshrl.u32 %v2244_v30, %v849_v57  ;;  %v2954_v5 = vld [vmem:[#allocation24_spill] sm:$0xff] }
 0x122   :  { %v854_v2 = vadd.s32 127, %v853_v15  ;;  %v465_v35 = vadd.s32 %v463_v28, %v461_v50  ;;  %v219_v37 = vsel %vm217_vm5, %v205_v52, %v218_v26  ;;  %v222_v10 = vsel %vm220_vm14, %v221_v22, %v213_v53  ;;  %v2951_v52 = vld [vmem:[#allocation20_spill] sm:$0xff]  ;;  %v2953_v22 = vld [vmem:[#allocation29_spill] sm:$0xff] }
 0x123   :  { %v478_v8 = vshll.u32 %v2358_v20, 16  ;;  %vm480_vm2 = vc.u32 %v472_v47, %v476_v21  ;;  %v223_v12 = vsel %vm216_vm15, %v219_v37, %v222_v10  ;;  %v852_v62 = vor.u32 %v851_v38, %v850_v58 }
 0x124   :  { %v855_v6 = vshll.u32 %v854_v2, 23  ;;  %v466_v54 = vadd.s32 %v465_v35, %v455_v59  ;;  %v224_v30 = vsel %vm214_vm0, nan, %v223_v12  ;;  %v436_v41 = vsel %vm430_vm7, %v433_v34, %v435_v63  ;;  %v2950_v34 = vld [vmem:[#allocation16_spill] sm:$0xff]  ;;  %v2952_v59 = vld [vmem:[#allocation21_spill] sm:$0xff] }
 0x125   :  { %v481_v16 = vsel %vm480_vm2, 1, %v2923_v19  ;;  %v482_v49 = vadd.s32 %v476_v21, %v472_v47  ;;  %v379_v17 = vmul.f32 %v1830_v0, %v224_v30  ;;  %v863_v33 = vsub.s32 4, %v2308_v40 }
 0x126   :  { %v856_v36 = vor.u32 4788187, %v855_v6  ;;  %v467_v27 = vadd.s32 %v466_v54, %v457_v43  ;;  %v477_v31 = vshrl.u32 %v473_v61, 16  ;;  %v483_v25 = vadd.s32 %v481_v16, %v475_v4 }
 0x127   :  { %vm484_vm3 = vc.u32 %v482_v49, %v478_v8  ;;  %v486_v24 = vadd.s32 %v482_v49, %v478_v8  ;;  %720 = vmatpush.xpose.msra.mxu0 %v379_v17  ;;  %1490 = vmatpush.xpose.msra.mxu2 %v379_v17  ;;  %v859_v29 = vcvt.s32.f32 %v852_v62  ;;  %v551_v63 = vand.u32 2147483647, %v2950_v34 }
 0x128   :  { %v857_v3 = vand.u32 2147483647, %v856_v36  ;;  %v485_v18 = vsel %vm484_vm3, 1, %v2923_v19  ;;  %v479_v46 = vshrl.u32 %v2358_v20, 16  ;;  %v864_v47 = vsel %vm741_vm13, %v863_v33, %v2308_v40  ;;  %v2955_v40 = vld [vmem:[#allocation22_spill] sm:$0xff] }
 0x129   :  { %v487_v56 = vadd.s32 %v485_v18, %v483_v25  ;;  %v2384_v7 = vadd.s32 %v486_v24, %v467_v27  ;;  %vm492_vm4 = vc.u32 %v467_v27, %v486_v24  ;;  %v558_v61 = vand.u32 8388607, %v551_v63 }
 0x12a   :  { %v860_v55 = vmul.f32 %v859_v29, %v857_v3  ;;  %v568_v32 = vshll.u32 %v2924_v11, %v2951_v52  ;;  %v569_v23 = vshrl.u32 %v2937_v45, %v2952_v59  ;;  %v571_v20 = vshll.u32 %v2937_v45, %v2951_v52 }
 0x12b   :  { %v488_v42 = vadd.s32 %v487_v56, %v477_v31  ;;  %v572_v53 = vshrl.u32 %v2921_v14, %v2952_v59  ;;  %vm1100_vm9 = vcmp.lt.s32.totalorder %v2953_v22, 4  ;;  %v2956_v50 = vor.u32 %v2954_v5, %v2955_v40 }
 0x12c   :  { %v861_v15 = vxor.u32 2147483648, %v860_v55  ;;  %v574_v43 = vshll.u32 %v2921_v14, %v2951_v52  ;;  %v575_v26 = vshrl.u32 %v2939_v13, %v2952_v59  ;;  %v2957_v28 = vand.u32 2147483647, %v2949_v44 }
 0x12d   :  { %v596_v57 = vsel %vm586_vm12, %v2956_v50, 1326507024  ;;  %v489_v21 = vadd.s32 %v488_v42, %v479_v46  ;;  %v573_v58 = vor.u32 %v572_v53, %v571_v20  ;;  %vm583_vm7 = vcmp.lt.s32.totalorder %v2297_v48, 1  ;;  %v2961_v20 = vld [vmem:[#allocation15_spill] sm:$0xff] }
 0x12e   :  { %vm2411_vm6 = vcmp.le.f32.partialorder %v2957_v28, 0.7853982  ;;  %v862_v38 = vsel %vm741_vm13, %v861_v15, %v860_v55  ;;  %v490_v35 = vmul.u32 %v2322_v39, %v436_v41  ;;  %v576_v37 = vor.u32 %v575_v26, %v574_v43 }
 0x12f   :  { %v866_v2 = vsel %vm2411_vm6, 0, %v864_v47  ;;  %v865_v10 = vsel %vm2411_vm6, %v2949_v44, %v862_v38  ;;  %v493_v8 = vadd.s32 1, %v489_v21  ;;  %v559_v12 = vor.u32 8388608, %v558_v61 }
 0x130   :  { %v570_v62 = vor.u32 %v569_v23, %v568_v32  ;;  %v592_v6 = vsel %vm586_vm12, %v2326_v60, 920167782  ;;  %v867_v54 = vmul.f32 %v865_v10, %v865_v10  ;;  %vm585_vm11 = vcmp.lt.s32.totalorder %v2297_v48, 3  ;;  %v2960_v23 = vld [vmem:[#allocation17_spill] sm:$0xff] }
 0x131   :  { %v595_v30 = vsel %vm583_vm7, %v573_v58, %v576_v37  ;;  %v2430_v16 = vand.u32 3, %v866_v2  ;;  %v494_v39 = vsel %vm492_vm4, %v493_v8, %v489_v21  ;;  %v567_v41 = vshrl.u32 %v2924_v11, %v2952_v59 }
 0x132   :  { %v597_v49 = vsel %vm585_vm11, %v2326_v60, %v596_v57  ;;  %v868_v17 = vmul.f32 -0.001358992, %v867_v54  ;;  %v875_v36 = vmul.f32 -0.00019511016, %v867_v54  ;;  %v495_v33 = vadd.s32 %v494_v39, %v490_v35 }
 0x133   :  { %vm584_vm5 = vcmp.lt.s32.totalorder %v2297_v48, 2  ;;  %v591_v31 = vsel %vm583_vm7, %v570_v62, %v573_v58  ;;  %v593_v25 = vsel %vm585_vm11, %v576_v37, %v592_v6  ;;  %v2445_v24 = vshll.u32 %v559_v12, 8 }
 0x134   :  { %v598_v27 = vsel %vm584_vm5, %v595_v30, %v597_v49  ;;  %v869_v3 = vadd.f32 0.041655596, %v868_v17  ;;  %v876_v29 = vadd.f32 0.008332121, %v875_v36  ;;  %v496_v18 = vadd.s32 536870912, %v495_v33 }
 0x135   :  { %v602_v60 = vand.u32 65535, %v598_v27  ;;  %v588_v46 = vsel %vm586_vm12, %v576_v37, 2102212464  ;;  %v600_v56 = vand.u32 65535, %v2445_v24  ;;  %v601_v55 = vshrl.u32 %v2445_v24, 16 }
 0x136   :  { %v603_v47 = vshrl.u32 %v598_v27, 16  ;;  %v870_v61 = vmul.f32 %v869_v3, %v867_v54  ;;  %v877_v52 = vmul.f32 %v876_v29, %v867_v54  ;;  %v2451_v32 = vshrl.u32 %v496_v18, 30 }
 0x137   :  { %v594_v42 = vsel %vm584_vm5, %v591_v31, %v593_v25  ;;  %v2458_v59 = vsel %vm1100_vm9, %v2294_v9, 920167782  ;;  %v2962_v53 = vor.u32 %v2960_v23, %v2961_v20  ;;  %v606_v50 = vmul.u32 %v602_v60, %v601_v55 }
 0x138   :  { %v605_v40 = vmul.u32 %v603_v47, %v600_v56  ;;  %v871_v57 = vadd.f32 -0.4999988, %v870_v61  ;;  %v878_v15 = vadd.f32 -0.16666654, %v877_v52  ;;  %v498_v43 = vshll.u32 %v2451_v32, 30 }
 0x139   :  { %v2465_v5 = vsel %vm1100_vm9, %v2962_v53, 1326507024  ;;  %v587_v26 = vsel %vm583_vm7, %v567_v41, %v570_v62  ;;  %v589_v28 = vsel %vm585_vm11, %v573_v58, %v588_v46  ;;  %v604_v4 = vmul.u32 %v602_v60, %v600_v56 }
 0x13a   :  { %v608_v21 = vshll.u32 %v605_v40, 16  ;;  %v625_v38 = vshrl.u32 %v594_v42, 16  ;;  %v872_v2 = vmul.f32 %v871_v57, %v867_v54  ;;  %v879_v35 = vmul.f32 %v878_v15, %v867_v54 }
 0x13b   :  { %vm884_vm14 = vcmp.lt.s32.totalorder %v2430_v16, 2  ;;  %v2473_v37 = vsub.s32 %v495_v33, %v498_v43  ;;  %v624_v8 = vand.u32 65535, %v594_v42  ;;  %vm882_vm15 = vweird.f32 %v2949_v44 }
 0x13c   :  { %v607_v12 = vmul.u32 %v603_v47, %v601_v55  ;;  %v610_v6 = vshll.u32 %v606_v50, 16  ;;  %vm612_vm0 = vc.u32 %v604_v4, %v608_v21  ;;  %v614_v30 = vadd.s32 %v608_v21, %v604_v4 }
 0x13d   :  { %v873_v62 = vadd.f32 1.0, %v872_v2  ;;  %v880_v39 = vadd.f32 1.0, %v879_v35  ;;  %vm500_vm8 = vcmp.lt.s32.totalorder %v2473_v37, 0  ;;  %v501_v58 = vsub.s32 0, %v2473_v37  ;;  %v2963_v2 = vld [vmem:[#allocation10_spill] sm:$0xff] }
 0x13e   :  { %vm885_vm10 = vcmp.eq.s32.totalorder %v2430_v16, 0  ;;  %v613_v54 = vsel %vm612_vm0, 1, %v2923_v19  ;;  %vm616_vm1 = vc.u32 %v614_v30, %v610_v6  ;;  %v627_v41 = vmul.u32 %v625_v38, %v600_v56 }
 0x13f   :  { %v881_v49 = vmul.f32 %v880_v39, %v865_v10  ;;  %v889_v17 = vxor.u32 2147483648, %v873_v62  ;;  %v502_v36 = vsel %vm500_vm8, %v501_v58, %v2473_v37  ;;  %v615_v33 = vadd.s32 %v613_v54, %v607_v12  ;;  %v2965_v54 = vld [vmem:[#allocation14_spill] sm:$0xff] }
 0x140   :  { %vm888_vm12 = vcmp.eq.s32.totalorder %v2430_v16, 2  ;;  %v503_v31 = vclz %v502_v36  ;;  %v2484_v25 = vsel %vm584_vm5, %v587_v26, %v589_v28  ;;  %v609_v27 = vshrl.u32 %v605_v40, 16 }
 0x141   :  { %v886_v3 = vxor.u32 2147483648, %v881_v49  ;;  %v890_v29 = vsel %vm888_vm12, %v889_v17, %v881_v49  ;;  %v617_v18 = vsel %vm616_vm1, 1, %v2923_v19  ;;  %v628_v60 = vmul.u32 %v624_v8, %v601_v55 }
 0x142   :  { %v1472_v46 = vadd.s32 4294967294, %v503_v31  ;;  %v619_v47 = vadd.s32 %v617_v18, %v615_v33  ;;  %v626_v10 = vmul.u32 %v624_v8, %v600_v56  ;;  %v630_v61 = vshll.u32 %v627_v41, 16 }
 0x143   :  { %v887_v52 = vsel %vm885_vm10, %v873_v62, %v886_v3  ;;  %v611_v42 = vshrl.u32 %v606_v50, 16  ;;  %v629_v23 = vmul.u32 %v625_v38, %v601_v55  ;;  %v632_v20 = vshll.u32 %v628_v60, 16 }
 0x144   :  { %v891_v48 = vsel %vm884_vm14, %v887_v52, %v890_v29  ;;  %vm1473_vm13 = vcmp.lt.s32.totalorder %v1472_v46, 0  ;;  %v620_v53 = vadd.s32 %v619_v47, %v609_v27  ;;  %vm634_vm2 = vc.u32 %v626_v10, %v630_v61 }
 0x145   :  { %v892_v40 = vsel %vm882_vm15, nan, %v891_v48  ;;  %v506_v57 = vsel %vm1473_vm13, 0, %v1472_v46  ;;  %v635_v15 = vsel %vm634_vm2, 1, %v2923_v19  ;;  %v636_v56 = vadd.s32 %v630_v61, %v626_v10  ;;  %v2966_v48 = vld [vmem:[#allocation31_spill] sm:$0xff] }
 0x146   :  { %v1047_v43 = vmul.f32 %v1830_v0, %v892_v40  ;;  %v507_v26 = vsub.s32 32, %v506_v57  ;;  %v508_v50 = vshll.u32 %v2473_v37, %v506_v57  ;;  %v511_v55 = vsub.s32 4294967266, %v506_v57 }
 0x147   :  { %v621_v28 = vadd.s32 %v620_v53, %v611_v42  ;;  %v637_v4 = vadd.s32 %v635_v15, %v629_v23  ;;  %vm638_vm3 = vc.u32 %v636_v56, %v632_v20  ;;  %v640_v16 = vadd.s32 %v636_v56, %v632_v20 }
 0x148   :  { %1388 = vmatpush.xpose.msra.mxu1 %v1047_v43  ;;  %1492 = vmatpush.xpose.msra.mxu3 %v1047_v43  ;;  %v509_v21 = vshrl.u32 %v2384_v7, %v507_v26  ;;  %v512_v44 = vadd.s32 127, %v511_v55  ;;  %v639_v38 = vsel %vm638_vm3, 1, %v2923_v19  ;;  %v1065_v35 = vand.u32 2147483647, %v2963_v2  ;;  %v2964_v7 = vld [vmem:[#allocation13_spill] sm:$0xff] }
 0x149   :  { %v631_v8 = vshrl.u32 %v627_v41, 16  ;;  %v641_v12 = vadd.s32 %v639_v38, %v637_v4  ;;  %v2499_v0 = vadd.s32 %v640_v16, %v621_v28  ;;  %vm646_vm4 = vc.u32 %v621_v28, %v640_v16  ;;  %v2969_v16 = vld [vmem:[#allocation32_spill] sm:$0xff] }
 0x14a   :  { %vm399_vm6 = vcmp.lt.s32.totalorder %v2931_v1, 0  ;;  %v510_v37 = vor.u32 %v509_v21, %v508_v50  ;;  %v513_v6 = vshll.u32 %v512_v44, 23  ;;  %v1072_v30 = vand.u32 8388607, %v1065_v35 }
 0x14b   :  { %v633_v62 = vshrl.u32 %v628_v60, 16  ;;  %v642_v39 = vadd.s32 %v641_v12, %v631_v8  ;;  %v1082_v58 = vshll.u32 %v2924_v11, %v2964_v7  ;;  %v1083_v49 = vshrl.u32 %v2937_v45, %v2965_v54  ;;  %v2970_v12 = vld [vmem:[#allocation33_spill] sm:$0xff] }
 0x14c   :  { %v514_v41 = vor.u32 4788187, %v513_v6  ;;  %v644_v17 = vmul.u32 %v2445_v24, %v2484_v25  ;;  %v1073_v36 = vor.u32 8388608, %v1072_v30  ;;  %v1085_v33 = vshll.u32 %v2937_v45, %v2964_v7 }
 0x14d   :  { %v521_v31 = vsub.s32 4, %v2451_v32  ;;  %v643_v27 = vadd.s32 %v642_v39, %v633_v62  ;;  %v1086_v3 = vshrl.u32 %v2921_v14, %v2965_v54  ;;  %v1088_v29 = vshll.u32 %v2921_v14, %v2964_v7 }
 0x14e   :  { %v515_v18 = vand.u32 2147483647, %v514_v41  ;;  %v517_v60 = vcvt.s32.f32 %v510_v37  ;;  %v1084_v46 = vor.u32 %v1083_v49, %v1082_v58  ;;  %v1089_v47 = vshrl.u32 %v2939_v13, %v2965_v54 }
 0x14f   :  { %v647_v24 = vadd.s32 1, %v643_v27  ;;  %v2519_v25 = vor.u32 %v1086_v3, %v1085_v33  ;;  %vm1097_vm7 = vcmp.lt.s32.totalorder %v2953_v22, 1  ;;  %vm1099_vm11 = vcmp.lt.s32.totalorder %v2953_v22, 3 }
 0x150   :  { %v518_v10 = vmul.f32 %v517_v60, %v515_v18  ;;  %v2523_v61 = vor.u32 %v1089_v47, %v1088_v29  ;;  %v1111_v52 = vsel %vm1099_vm11, %v2294_v9, %v2465_v5  ;;  %v2529_v42 = vshll.u32 %v1073_v36, 8 }
 0x151   :  { %v522_v23 = vsel %vm399_vm6, %v521_v31, %v2451_v32  ;;  %v648_v20 = vsel %vm646_vm4, %v647_v24, %v643_v27  ;;  %vm1098_vm5 = vcmp.lt.s32.totalorder %v2953_v22, 2  ;;  %v2537_v53 = vshrl.u32 %v2966_v48, 5 }
 0x152   :  { %vm2541_vm14 = vcmp.le.f32.partialorder %v397_v51, 0.7853982  ;;  %v519_v9 = vxor.u32 2147483648, %v518_v10  ;;  %v649_v5 = vadd.s32 %v648_v20, %v644_v17  ;;  %v1105_v57 = vsel %vm1097_vm7, %v1084_v46, %v2519_v25 }
 0x153   :  { %v1107_v32 = vsel %vm1099_vm11, %v2523_v61, %v2458_v59  ;;  %v1109_v15 = vsel %vm1097_vm7, %v2519_v25, %v2523_v61  ;;  %v1114_v51 = vand.u32 65535, %v2529_v42  ;;  %v524_v43 = vsel %vm2541_vm14, 0, %v522_v23 }
 0x154   :  { %v520_v56 = vsel %vm399_vm6, %v519_v9, %v518_v10  ;;  %v650_v26 = vadd.s32 536870912, %v649_v5  ;;  %v1112_v50 = vsel %vm1098_vm5, %v1109_v15, %v1111_v52  ;;  %v1115_v55 = vshrl.u32 %v2529_v42, 16 }
 0x155   :  { %v2566_v59 = vsel %vm2541_vm14, %v2931_v1, %v520_v56  ;;  %v1116_v28 = vand.u32 65535, %v1112_v50  ;;  %v1117_v4 = vshrl.u32 %v1112_v50, 16  ;;  %v1245_v21 = vshll.u32 %v2939_v13, %v2969_v16 }
 0x156   :  { %v525_v44 = vmul.f32 %v2566_v59, %v2566_v59  ;;  %v2573_v38 = vshrl.u32 %v650_v26, 30  ;;  %v1108_v8 = vsel %vm1098_vm5, %v1105_v57, %v1107_v32  ;;  %v2971_v37 = vmov 920167782  }
 0x157   :  { %v1246_v6 = vshrl.u32 %v2971_v37, %v2970_v12  ;;  %v1118_v30 = vmul.u32 %v1116_v28, %v1114_v51  ;;  %v1119_v62 = vmul.u32 %v1117_v4, %v1114_v51  ;;  %v1120_v39 = vmul.u32 %v1116_v28, %v1115_v55 }
 0x158   :  { %v526_v7 = vmul.f32 -0.001358992, %v525_v44  ;;  %v533_v58 = vmul.f32 -0.00019511016, %v525_v44  ;;  %v2579_v49 = vand.u32 3, %v524_v43  ;;  %v652_v41 = vshll.u32 %v2573_v38, 30 }
 0x159   :  { %v1081_v17 = vshrl.u32 %v2924_v11, %v2965_v54  ;;  %v1122_v36 = vshll.u32 %v1119_v62, 16  ;;  %v1124_v33 = vshll.u32 %v1120_v39, 16  ;;  %v1139_v31 = vshrl.u32 %v1108_v8, 16  ;;  %v2972_v43 = vld [vmem:[#allocation19_spill] sm:$0xff] }
 0x15a   :  { %v527_v27 = vadd.f32 0.041655596, %v526_v7  ;;  %v534_v3 = vadd.f32 0.008332121, %v533_v58  ;;  %v2584_v29 = vsub.s32 %v649_v5, %v652_v41  ;;  %v1121_v18 = vmul.u32 %v1117_v4, %v1115_v55 }
 0x15b   :  { %v2586_v60 = vor.u32 %v1246_v6, %v1245_v21  ;;  %vm1126_vm15 = vc.u32 %v1118_v30, %v1122_v36  ;;  %v1128_v47 = vadd.s32 %v1122_v36, %v1118_v30  ;;  %v1138_v24 = vand.u32 65535, %v1108_v8 }
 0x15c   :  { %v528_v10 = vmul.f32 %v527_v27, %v525_v44  ;;  %v535_v52 = vmul.f32 %v534_v3, %v525_v44  ;;  %vm654_vm0 = vcmp.lt.s32.totalorder %v2584_v29, 0  ;;  %v655_v23 = vsub.s32 0, %v2584_v29 }
 0x15d   :  { %vm546_vm8 = vcmp.eq.s32.totalorder %v2579_v49, 2  ;;  %v2593_v54 = vsel %vm1097_vm7, %v1081_v17, %v1084_v46  ;;  %v1127_v20 = vsel %vm1126_vm15, 1, %v2923_v19  ;;  %vm1130_vm10 = vc.u32 %v1128_v47, %v1124_v33 }
 0x15e   :  { %v2596_v48 = vmul.u32 %v1139_v31, %v1114_v51  ;;  %v529_v40 = vadd.f32 -0.4999988, %v528_v10  ;;  %v536_v9 = vadd.f32 -0.16666654, %v535_v52  ;;  %v656_v5 = vsel %vm654_vm0, %v655_v23, %v2584_v29 }
 0x15f   :  { %v1129_v57 = vadd.s32 %v1127_v20, %v1121_v18  ;;  %vm543_vm1 = vcmp.eq.s32.totalorder %v2579_v49, 0  ;;  %v657_v32 = vclz %v656_v5  ;;  %v1123_v15 = vshrl.u32 %v1119_v62, 16 }
 0x160   :  { %v1140_v56 = vmul.u32 %v1138_v24, %v1114_v51  ;;  %v1219_v26 = vand.u32 2147483647, %v2972_v43  ;;  %v530_v50 = vmul.f32 %v529_v40, %v525_v44  ;;  %v537_v46 = vmul.f32 %v536_v9, %v525_v44 }
 0x161   :  { %vm542_vm12 = vcmp.lt.s32.totalorder %v2579_v49, 2  ;;  %v1131_v28 = vsel %vm1130_vm10, 1, %v2923_v19  ;;  %v1142_v4 = vmul.u32 %v1138_v24, %v1115_v55  ;;  %vm540_vm13 = vweird.f32 %v2931_v1 }
 0x162   :  { %v1475_v21 = vadd.s32 4294967294, %v657_v32  ;;  %v1125_v8 = vshrl.u32 %v1120_v39, 16  ;;  %v1133_v37 = vadd.s32 %v1131_v28, %v1129_v57  ;;  %v1144_v6 = vshll.u32 %v2596_v48, 16 }
 0x163   :  { %vm1254_vm2 = vcmp.lt.s32.totalorder %v2537_v53, 4  ;;  %v531_v30 = vadd.f32 1.0, %v530_v50  ;;  %v538_v51 = vadd.f32 1.0, %v537_v46  ;;  %v1102_v44 = vsel %vm1100_vm9, %v2523_v61, 2102212464 }
 0x164   :  { %v1143_v62 = vmul.u32 %v1139_v31, %v1115_v55  ;;  %vm1476_vm3 = vcmp.lt.s32.totalorder %v1475_v21, 0  ;;  %v1134_v7 = vadd.s32 %v1133_v37, %v1123_v15  ;;  %v1146_v58 = vshll.u32 %v1142_v4, 16  ;;  %v2974_v15 = vld [vmem:[#allocation34_spill] sm:$0xff] }
 0x165   :  { %vm1148_vm4 = vc.u32 %v1140_v56, %v1144_v6  ;;  %v539_v41 = vmul.f32 %v538_v51, %v2566_v59  ;;  %v547_v17 = vxor.u32 2147483648, %v531_v30  ;;  %v660_v39 = vsel %vm1476_vm3, 0, %v1475_v21 }
 0x166   :  { %v1149_v36 = vsel %vm1148_vm4, 1, %v2923_v19  ;;  %v661_v33 = vsub.s32 32, %v660_v39  ;;  %v665_v27 = vsub.s32 4294967266, %v660_v39  ;;  %v1103_v3 = vsel %vm1099_vm11, %v2519_v25, %v1102_v44 }
 0x167   :  { %v1135_v18 = vadd.s32 %v1134_v7, %v1125_v8  ;;  %v544_v47 = vxor.u32 2147483648, %v539_v41  ;;  %v548_v61 = vsel %vm546_vm8, %v547_v17, %v539_v41  ;;  %v1150_v55 = vadd.s32 %v1144_v6, %v1140_v56 }
 0x168   :  { %v1151_v31 = vadd.s32 %v1149_v36, %v1143_v62  ;;  %v662_v24 = vshll.u32 %v2584_v29, %v660_v39  ;;  %v663_v59 = vshrl.u32 %v2499_v0, %v661_v33  ;;  %v666_v10 = vadd.s32 127, %v665_v27 }
 0x169   :  { %v1145_v52 = vshrl.u32 %v2596_v48, 16  ;;  %v545_v23 = vsel %vm543_vm1, %v531_v30, %v544_v47  ;;  %v1147_v20 = vshrl.u32 %v1142_v4, 16  ;;  %vm1152_vm9 = vc.u32 %v1150_v55, %v1146_v58  ;;  %v2973_v48 = vld [vmem:[#allocation35_spill] sm:$0xff] }
 0x16a   :  { %v1154_v25 = vadd.s32 %v1150_v55, %v1146_v58  ;;  %v549_v40 = vsel %vm542_vm12, %v545_v23, %v548_v61  ;;  %v664_v9 = vor.u32 %v663_v59, %v662_v24  ;;  %v667_v5 = vshll.u32 %v666_v10, 23 }
 0x16b   :  { %v1153_v57 = vsel %vm1152_vm9, 1, %v2923_v19  ;;  %v550_v29 = vsel %vm540_vm13, nan, %v549_v40  ;;  %v2975_v56 = vor.u32 %v2973_v48, %v2974_v15  ;;  %v1104_v46 = vsel %vm1098_vm5, %v2593_v54, %v1103_v3 }
 0x16c   :  { %v1155_v0 = vadd.s32 %v1153_v57, %v1151_v31  ;;  %v2626_v32 = vadd.s32 %v1154_v25, %v1135_v18  ;;  %vm1160_vm6 = vc.u32 %v1135_v18, %v1154_v25  ;;  %721 = vmatmul.f32.vlgmr.msra.gmra.mxu0 %v550_v29  ;;  %v668_v49 = vor.u32 4788187, %v667_v5 }
 0x16d   :  { %v1264_v50 = vsel %vm1254_vm2, %v2975_v56, 1326507024  ;;  %v1226_v1 = vand.u32 8388607, %v1219_v26  ;;  %v671_v28 = vcvt.s32.f32 %v664_v9  ;;  %v675_v4 = vsub.s32 4, %v2573_v38 }
 0x16e   :  { %v1156_v21 = vadd.s32 %v1155_v0, %v1145_v52  ;;  %v1237_v8 = vshrl.u32 %v2937_v45, %v2970_v12  ;;  %v669_v37 = vand.u32 2147483647, %v668_v49  ;;  %v1236_v6 = vshll.u32 %v2924_v11, %v2969_v16 }
 0x16f   :  { %v1239_v30 = vshll.u32 %v2937_v45, %v2969_v16  ;;  %v1240_v22 = vshrl.u32 %v2921_v14, %v2970_v12  ;;  %v1227_v51 = vor.u32 8388608, %v1226_v1  ;;  %v1242_v44 = vshll.u32 %v2921_v14, %v2969_v16 }
 0x170   :  { %v1157_v54 = vadd.s32 %v1156_v21, %v1147_v20  ;;  %v1243_v62 = vshrl.u32 %v2939_v13, %v2970_v12  ;;  %v1260_v7 = vsel %vm1254_vm2, %v2586_v60, 920167782  ;;  %v672_v58 = vmul.f32 %v671_v28, %v669_v37 }
 0x171   :  { %v2654_v41 = vor.u32 %v1240_v22, %v1239_v30  ;;  %vm1253_vm7 = vcmp.lt.s32.totalorder %v2537_v53, 3  ;;  %v2657_v17 = vor.u32 %v1237_v8, %v1236_v6  ;;  %vm553_vm11 = vcmp.lt.s32.totalorder %v2950_v34, 0 }
 0x172   :  { %v1161_v45 = vadd.s32 1, %v1157_v54  ;;  %v2659_v39 = vor.u32 %v1243_v62, %v1242_v44  ;;  %v1265_v14 = vsel %vm1253_vm7, %v2586_v60, %v1264_v50  ;;  %v673_v13 = vxor.u32 2147483648, %v672_v58 }
 0x173   :  { %v1158_v16 = vmul.u32 %v2529_v42, %v1104_v46  ;;  %vm1251_vm5 = vcmp.lt.s32.totalorder %v2537_v53, 1  ;;  %v676_v36 = vsel %vm553_vm11, %v675_v4, %v2573_v38  ;;  %v2673_v3 = vshll.u32 %v1227_v51, 8 }
 0x174   :  { %v1162_v33 = vsel %vm1160_vm6, %v1161_v45, %v1157_v54  ;;  %v1263_v27 = vsel %vm1251_vm5, %v2654_v41, %v2659_v39  ;;  %vm2677_vm14 = vcmp.le.f32.partialorder %v551_v63, 0.7853982  ;;  %v674_v42 = vsel %vm553_vm11, %v673_v13, %v672_v58 }
 0x175   :  { %v1163_v47 = vadd.s32 %v1162_v33, %v1158_v16  ;;  %vm1252_vm15 = vcmp.lt.s32.totalorder %v2537_v53, 2  ;;  %v677_v38 = vsel %vm2677_vm14, %v2950_v34, %v674_v42  ;;  %v1259_v18 = vsel %vm1251_vm5, %v2657_v17, %v2654_v41 }
 0x176   :  { %v1261_v63 = vsel %vm1253_vm7, %v2659_v39, %v1260_v7  ;;  %v1266_v61 = vsel %vm1252_vm15, %v1263_v27, %v1265_v14  ;;  %v678_v55 = vsel %vm2677_vm14, 0, %v676_v36  ;;  %v679_v31 = vmul.f32 %v677_v38, %v677_v38 }
 0x177   :  { %v1164_v24 = vadd.s32 536870912, %v1163_v47  ;;  %v1270_v59 = vand.u32 65535, %v1266_v61  ;;  %v1268_v10 = vand.u32 65535, %v2673_v3  ;;  %v1269_v52 = vshrl.u32 %v2673_v3, 16 }
 0x178   :  { %v1271_v23 = vshrl.u32 %v1266_v61, 16  ;;  %v680_v20 = vmul.f32 -0.001358992, %v679_v31  ;;  %v687_v25 = vmul.f32 -0.00019511016, %v679_v31  ;;  %v1262_v9 = vsel %vm1252_vm15, %v1259_v18, %v1261_v63 }
 0x179   :  { %v2698_v40 = vshrl.u32 %v1164_v24, 30  ;;  %v2702_v5 = vand.u32 3, %v678_v55  ;;  %v1274_v29 = vmul.u32 %v1270_v59, %v1269_v52  ;;  %v1272_v56 = vmul.u32 %v1270_v59, %v1268_v10 }
 0x17a   :  { %v1273_v57 = vmul.u32 %v1271_v23, %v1268_v10  ;;  %v681_v0 = vadd.f32 0.041655596, %v680_v20  ;;  %v688_v48 = vadd.f32 0.008332121, %v687_v25  ;;  %v1292_v49 = vand.u32 65535, %v1262_v9 }
 0x17b   :  { %v1166_v15 = vshll.u32 %v2698_v40, 30  ;;  %v1293_v46 = vshrl.u32 %v1262_v9, 16  ;;  %v2709_v21 = vshrl.u32 %v2924_v11, %v2970_v12  ;;  %vm700_vm0 = vcmp.eq.s32.totalorder %v2702_v5, 2 }
 0x17c   :  { %v1276_v50 = vshll.u32 %v1273_v57, 16  ;;  %v682_v1 = vmul.f32 %v681_v0, %v679_v31  ;;  %v689_v28 = vmul.f32 %v688_v48, %v679_v31  ;;  %v1275_v8 = vmul.u32 %v1271_v23, %v1269_v52 }
 0x17d   :  { %v2705_v4 = vsub.s32 %v1163_v47, %v1166_v15  ;;  %v1278_v37 = vshll.u32 %v1274_v29, 16  ;;  %vm697_vm1 = vcmp.eq.s32.totalorder %v2702_v5, 0  ;;  %v1295_v11 = vmul.u32 %v1293_v46, %v1268_v10 }
 0x17e   :  { %vm1280_vm8 = vc.u32 %v1272_v56, %v1276_v50  ;;  %v1282_v6 = vadd.s32 %v1276_v50, %v1272_v56  ;;  %v683_v30 = vadd.f32 -0.4999988, %v682_v1  ;;  %v690_v22 = vadd.f32 -0.16666654, %v689_v28 }
 0x17f   :  { %vm1168_vm10 = vcmp.lt.s32.totalorder %v2705_v4, 0  ;;  %v1169_v54 = vsub.s32 0, %v2705_v4  ;;  %v1281_v51 = vsel %vm1280_vm8, 1, %v2923_v19  ;;  %v1296_v12 = vmul.u32 %v1292_v49, %v1269_v52 }
 0x180   :  { %vm2716_vm12 = vc.u32 %v1282_v6, %v1278_v37  ;;  %v684_v62 = vmul.f32 %v683_v30, %v679_v31  ;;  %v691_v7 = vmul.f32 %v690_v22, %v679_v31  ;;  %vm696_vm13 = vcmp.lt.s32.totalorder %v2702_v5, 2 }
 0x181   :  { %v1170_v58 = vsel %vm1168_vm10, %v1169_v54, %v2705_v4  ;;  %v1283_v45 = vadd.s32 %v1281_v51, %v1275_v8  ;;  %vm694_vm3 = vweird.f32 %v2950_v34  ;;  %v1256_v13 = vsel %vm1254_vm2, %v2659_v39, 2102212464 }
 0x182   :  { %v1171_v14 = vclz %v1170_v58  ;;  %v1277_v16 = vshrl.u32 %v1273_v57, 16  ;;  %v1294_v36 = vmul.u32 %v1292_v49, %v1268_v10  ;;  %v685_v33 = vadd.f32 1.0, %v684_v62 }
 0x183   :  { %v692_v27 = vadd.f32 1.0, %v691_v7  ;;  %v1279_v60 = vshrl.u32 %v1274_v29, 16  ;;  %v1285_v42 = vsel %vm2716_vm12, 1, %v2923_v19  ;;  %v1297_v63 = vmul.u32 %v1293_v46, %v1269_v52 }
 0x184   :  { %v1484_v47 = vadd.s32 4294967294, %v1171_v14  ;;  %v1287_v18 = vadd.s32 %v1285_v42, %v1283_v45  ;;  %v1298_v61 = vshll.u32 %v1295_v11, 16  ;;  %v701_v31 = vxor.u32 2147483648, %v685_v33 }
 0x185   :  { %v693_v55 = vmul.f32 %v692_v27, %v677_v38  ;;  %v1299_v24 = vshrl.u32 %v1295_v11, 16  ;;  %v1300_v59 = vshll.u32 %v1296_v12, 16  ;;  %v1255_v5 = vsel %vm1251_vm5, %v2709_v21, %v2657_v17 }
 0x186   :  { %vm1485_vm4 = vcmp.lt.s32.totalorder %v1484_v47, 0  ;;  %v1288_v23 = vadd.s32 %v1287_v18, %v1277_v16  ;;  %vm1302_vm2 = vc.u32 %v1294_v36, %v1298_v61  ;;  %v1304_v39 = vadd.s32 %v1298_v61, %v1294_v36 }
 0x187   :  { %v698_v10 = vxor.u32 2147483648, %v693_v55  ;;  %v702_v20 = vsel %vm700_vm0, %v701_v31, %v693_v55  ;;  %v1174_v25 = vsel %vm1485_vm4, 0, %v1484_v47  ;;  %v1303_v9 = vsel %vm1302_vm2, 1, %v2923_v19 }
 0x188   :  { %v1175_v57 = vsub.s32 32, %v1174_v25  ;;  %v1176_v29 = vshll.u32 %v2705_v4, %v1174_v25  ;;  %v1179_v52 = vsub.s32 4294967266, %v1174_v25  ;;  %v1289_v0 = vadd.s32 %v1288_v23, %v1279_v60 }
 0x189   :  { %v699_v38 = vsel %vm697_vm1, %v685_v33, %v698_v10  ;;  %v1305_v48 = vadd.s32 %v1303_v9, %v1297_v63  ;;  %vm1306_vm9 = vc.u32 %v1304_v39, %v1300_v59  ;;  %v1308_v15 = vadd.s32 %v1304_v39, %v1300_v59 }
 0x18a   :  { %v703_v56 = vsel %vm696_vm13, %v699_v38, %v702_v20  ;;  %v1177_v50 = vshrl.u32 %v2626_v32, %v1175_v57  ;;  %v1180_v49 = vadd.s32 127, %v1179_v52  ;;  %v1307_v46 = vsel %vm1306_vm9, 1, %v2923_v19 }
 0x18b   :  { %v704_v1 = vsel %vm694_vm3, nan, %v703_v56  ;;  %v1309_v28 = vadd.s32 %v1307_v46, %v1305_v48  ;;  %v1313_v4 = vadd.s32 %v1308_v15, %v1289_v0  ;;  %vm1314_vm6 = vc.u32 %v1289_v0, %v1308_v15 }
 0x18c   :  { %724 = vmatmul.f32.vlgmr.msra.gmra.mxu2 %v704_v1  ;;  %v1178_v8 = vor.u32 %v1177_v50, %v1176_v29  ;;  %v1181_v37 = vshll.u32 %v1180_v49, 23  ;;  %v1257_v32 = vsel %vm1253_vm7, %v2654_v41, %v1256_v13  ;;  %v1301_v6 = vshrl.u32 %v1296_v12, 16 }
 0x18d   :  { %v1310_v19 = vadd.s32 %v1309_v28, %v1299_v24  ;;  %v1258_v34 = vsel %vm1252_vm15, %v1255_v5, %v1257_v32  ;;  %vm1067_vm11 = vcmp.lt.s32.totalorder %v2963_v2, 0  ;;  %vm2755_vm7 = vcmp.le.f32.partialorder %v1065_v35, 0.7853982 }
 0x18e   :  { %v1182_v30 = vor.u32 4788187, %v1181_v37  ;;  %v1185_v51 = vcvt.s32.f32 %v1178_v8  ;;  %v1312_v62 = vmul.u32 %v2673_v3, %v1258_v34  ;;  %v1189_v14 = vsub.s32 4, %v2698_v40 }
 0x18f   :  { %v1311_v22 = vadd.s32 %v1310_v19, %v1301_v6  ;;  %vm1208_vm10 = vweird.f32 %v2963_v2  ;;  %vm41_vm1 = vcmask 130048   ;;  %v2982_v37 = vmov 0.0  }
 0x190   :  { %v1183_v54 = vand.u32 2147483647, %v1182_v30  ;;  %v1190_v60 = vsel %vm1067_vm11, %v1189_v14, %v2698_v40  ;;  %42 = vst.msk [vmem:[#allocation2] sm:$0xff] %vm41_vm1, %v2982_v37  ;;  %vm1221_vm12 = vcmp.lt.s32.totalorder %v2972_v43, 0  ;;  %vm2781_vm13 = vcmp.le.f32.partialorder %v1219_v26, 0.7853982 }
 0x191   :  { %v1315_v44 = vadd.s32 1, %v1311_v22  ;;  %v1192_v63 = vsel %vm2755_vm7, 0, %v1190_v60  ;;  %43 = vst.msk [vmem:[#allocation2 + $0x8] sm:$0xff] %vm41_vm1, %v2982_v37  ;;  %vm1362_vm9 = vweird.f32 %v2972_v43 }
 0x192   :  { %v1186_v11 = vmul.f32 %v1185_v51, %v1183_v54  ;;  %v1209_v39 = vand.u32 3, %v1192_v63  ;;  %44 = vst.msk [vmem:[#allocation2 + $0x10] sm:$0xff] %vm41_vm1, %v2982_v37 }
 0x193   :  { %v1316_v7 = vsel %vm1314_vm6, %v1315_v44, %v1311_v22  ;;  %45 = vst.msk [vmem:[#allocation2 + $0x18] sm:$0xff] %vm41_vm1, %v2982_v37  ;;  %vm1427_vm6 = vcmask 122880  }
 0x194   :  { %v1187_v17 = vxor.u32 2147483648, %v1186_v11  ;;  %v1317_v21 = vadd.s32 %v1316_v7, %v1312_v62  ;;  %vm1214_vm15 = vcmp.eq.s32.totalorder %v1209_v39, 2  ;;  %vm1211_vm0 = vcmp.eq.s32.totalorder %v1209_v39, 0 }
 0x195   :  { %vm1210_vm8 = vcmp.lt.s32.totalorder %v1209_v39, 2  ;;  %v1409_v39 = vld [vmem:[%s2822_s4 + $0x8] sm:$0xff] }
 0x196   :  { %v1188_v53 = vsel %vm1067_vm11, %v1187_v17, %v1186_v11  ;;  %v1318_v12 = vadd.s32 536870912, %v1317_v21 }
 0x197   :  { %v1191_v58 = vsel %vm2755_vm7, %v2963_v2, %v1188_v53  ;;  %v728_v60 = vld [vmem:[#allocation2] sm:$0xff] }
 0x198   :  { %v1193_v45 = vmul.f32 %v1191_v58, %v1191_v58  ;;  %v2762_v3 = vshrl.u32 %v1318_v12, 30 }
 0x19a   :  { %v1194_v13 = vmul.f32 -0.001358992, %v1193_v45  ;;  %v1201_v16 = vmul.f32 -0.00019511016, %v1193_v45  ;;  %v1320_v36 = vshll.u32 %v2762_v3, 30  ;;  %v1343_v22 = vsub.s32 4, %v2762_v3 }
 0x19c   :  { %v1195_v33 = vadd.f32 0.041655596, %v1194_v13  ;;  %v1202_v35 = vadd.f32 0.008332121, %v1201_v16  ;;  %v1321_v27 = vsub.s32 %v1317_v21, %v1320_v36  ;;  %v1344_v62 = vsel %vm1221_vm12, %v1343_v22, %v2762_v3 }
 0x19d   :  { %v1346_v26 = vsel %vm2781_vm13, 0, %v1344_v62 }
 0x19e   :  { %v1196_v42 = vmul.f32 %v1195_v33, %v1193_v45  ;;  %v1203_v47 = vmul.f32 %v1202_v35, %v1193_v45  ;;  %vm1322_vm5 = vcmp.lt.s32.totalorder %v1321_v27, 0  ;;  %v1323_v18 = vsub.s32 0, %v1321_v27 }
 0x1a0   :  { %v1197_v61 = vadd.f32 -0.4999988, %v1196_v42  ;;  %v1204_v55 = vadd.f32 -0.16666654, %v1203_v47  ;;  %v1324_v31 = vsel %vm1322_vm5, %v1323_v18, %v1321_v27  ;;  %v729_v18 = vld [vmem:[#allocation2 + $0x8] sm:$0xff] }
 0x1a1   :  { %v1325_v24 = vclz %v1324_v31 }
 0x1a2   :  { %v1198_v59 = vmul.f32 %v1197_v61, %v1193_v45  ;;  %v1205_v23 = vmul.f32 %v1204_v55, %v1193_v45  ;;  %v1397_v55 = vld [vmem:[#allocation2 + $0x10] sm:$0xff] }
 0x1a3   :  { %v1487_v10 = vadd.s32 4294967294, %v1325_v24 }
 0x1a4   :  { %v1199_v20 = vadd.f32 1.0, %v1198_v59  ;;  %v1206_v25 = vadd.f32 1.0, %v1205_v23  ;;  %v1407_v59 = vld [vmem:[%s2821_s3 + $0x8] sm:$0xff]  ;;  %v1408_v23 = vld [vmem:[%s2822_s4] sm:$0xff] }
 0x1a5   :  { %vm1488_vm14 = vcmp.lt.s32.totalorder %v1487_v10, 0 }
 0x1a6   :  { %v1207_v9 = vmul.f32 %v1206_v25, %v1191_v58  ;;  %v1215_v40 = vxor.u32 2147483648, %v1199_v20  ;;  %v1328_v57 = vsel %vm1488_vm14, 0, %v1487_v10  ;;  %v1363_v58 = vand.u32 3, %v1346_v26 }
 0x1a7   :  { %v1329_v29 = vsub.s32 32, %v1328_v57  ;;  %v1333_v52 = vsub.s32 4294967266, %v1328_v57  ;;  %v1330_v48 = vshll.u32 %v1321_v27, %v1328_v57 }
 0x1a8   :  { %v1212_v0 = vxor.u32 2147483648, %v1207_v9  ;;  %v1216_v38 = vsel %vm1214_vm15, %v1215_v40, %v1207_v9  ;;  %vm1368_vm3 = vcmp.eq.s32.totalorder %v1363_v58, 2  ;;  %vm1365_vm4 = vcmp.eq.s32.totalorder %v1363_v58, 0 }
 0x1a9   :  { %v1331_v15 = vshrl.u32 %v1313_v4, %v1329_v29  ;;  %v1334_v56 = vadd.s32 127, %v1333_v52  ;;  %vm1364_vm2 = vcmp.lt.s32.totalorder %v1363_v58, 2 }
 0x1aa   :  { %v1213_v50 = vsel %vm1211_vm0, %v1199_v20, %v1212_v0 }
 0x1ab   :  { %v1217_v49 = vsel %vm1210_vm8, %v1213_v50, %v1216_v38  ;;  %v1332_v46 = vor.u32 %v1331_v15, %v1330_v48  ;;  %v1335_v1 = vshll.u32 %v1334_v56, 23 }
 0x1ac   :  { %v1218_v28 = vsel %vm1208_vm10, nan, %v1217_v49 }
 0x1ad   :  { %1389 = vmatmul.f32.vlgmr.msra.gmra.mxu1 %v1218_v28  ;;  %v1336_v8 = vor.u32 4788187, %v1335_v1  ;;  %v1339_v4 = vcvt.s32.f32 %v1332_v46  ;;  %v1398_v28 = vld [vmem:[#allocation2 + $0x18] sm:$0xff] }
 0x1af   :  { %v1337_v5 = vand.u32 2147483647, %v1336_v8 }
 0x1b1   :  { %v1340_v2 = vmul.f32 %v1339_v4, %v1337_v5 }
 0x1b3   :  { %v1341_v32 = vxor.u32 2147483648, %v1340_v2 }
 0x1b5   :  { %v1342_v19 = vsel %vm1221_vm12, %v1341_v32, %v1340_v2 }
 0x1b6   :  { %v1345_v30 = vsel %vm2781_vm13, %v2972_v43, %v1342_v19  ;;  %v1406_v43 = vld [vmem:[%s2821_s3] sm:$0xff]  ;;  %s1575_s3 = smov [#allocation6]  }
 0x1b7   :  { %v1347_v34 = vmul.f32 %v1345_v30, %v1345_v30  ;;  %s1452_s4 = sshll.u32 %s1575_s3, 4  ;;  %s1453_s4 = int_to_ptr.vmem [resolvable:$true] %s1452_s4 }
 0x1b9   :  { %v1348_v54 = vmul.f32 -0.001358992, %v1347_v34  ;;  %v1355_v51 = vmul.f32 -0.00019511016, %v1347_v34 }
 0x1bb   :  { %v1349_v44 = vadd.f32 0.041655596, %v1348_v54  ;;  %v1356_v11 = vadd.f32 0.008332121, %v1355_v51 }
 0x1bd   :  { %v1350_v7 = vmul.f32 %v1349_v44, %v1347_v34  ;;  %v1357_v17 = vmul.f32 %v1356_v11, %v1347_v34 }
 0x1bf   :  { %v1351_v21 = vadd.f32 -0.4999988, %v1350_v7  ;;  %v1358_v41 = vadd.f32 -0.16666654, %v1357_v17 }
 0x1c1   :  { %v1352_v53 = vmul.f32 %v1351_v21, %v1347_v34  ;;  %v1359_v12 = vmul.f32 %v1358_v41, %v1347_v34 }
 0x1c3   :  { %v1353_v45 = vadd.f32 1.0, %v1352_v53  ;;  %v1360_v14 = vadd.f32 1.0, %v1359_v12 }
 0x1c5   :  { %v1361_v13 = vmul.f32 %v1360_v14, %v1345_v30  ;;  %v1369_v16 = vxor.u32 2147483648, %v1353_v45 }
 0x1c7   :  { %v1366_v36 = vxor.u32 2147483648, %v1361_v13  ;;  %v1370_v33 = vsel %vm1368_vm3, %v1369_v16, %v1361_v13 }
 0x1c9   :  { %v1367_v3 = vsel %vm1365_vm4, %v1353_v45, %v1366_v36 }
 0x1ca   :  { %v1371_v35 = vsel %vm1364_vm2, %v1367_v3, %v1370_v33 }
 0x1cb   :  { %v1372_v27 = vsel %vm1362_vm9, nan, %v1371_v35 }
 0x1cc   :  { %1392 = vmatmul.f32.vlgmr.msra.gmra.mxu3 %v1372_v27 }
 0x1e9   :  { %v722_v42 = vpop.f32.mrf.mxu0 }
 0x1ea   :  { %v730_v47 = vadd.f32 %v728_v60, %v722_v42 }
 0x1ec   :  { %733 = vst.msk [vmem:[#allocation2] sm:$0xff] %vm41_vm1, %v730_v47 }
 0x1f3   :  { %v1410_v10 = vld [vmem:[#allocation2] sm:$0xff] }
 0x1f4   :  { %v1412_v25 = vmul.f32 %v1410_v10, %v1406_v43 }
 0x1f6   :  { %v1414_v40 = vsub.f32 %v1412_v25, %v1408_v23 }
 0x1f8   :  { %v1416_v29 = vmul.f32 %v1414_v40, %v1414_v40 }
 0x1fa   :  { %v1418_v0 = vsel %vm41_vm1, %v1416_v29, 0.0 }
 0x20f   :  { %v725_v63 = vpop.f32.mrf.mxu2 }
 0x210   :  { %v731_v61 = vadd.f32 %v729_v18, %v725_v63 }
 0x212   :  { %734 = vst.msk [vmem:[#allocation2 + $0x8] sm:$0xff] %vm41_vm1, %v731_v61 }
 0x219   :  { %v1411_v20 = vld [vmem:[#allocation2 + $0x8] sm:$0xff] }
 0x21a   :  { %v1413_v9 = vmul.f32 %v1411_v20, %v1407_v59 }
 0x21c   :  { %v1415_v57 = vsub.f32 %v1413_v9, %v1409_v39 }
 0x21e   :  { %v1417_v52 = vmul.f32 %v1415_v57, %v1415_v57 }
 0x220   :  { %v1419_v38 = vsel %vm41_vm1, %v1417_v52, 0.0 }
 0x221   :  { %v1420_v48 = vadd.f32 %v1419_v38, %v1418_v0 }
 0x223   :  { %v1421_v15 = vrot.slane %v1420_v48, 4 }
 0x225   :  { %v1422_v56 = vadd.f32 %v1421_v15, %v1420_v48 }
 0x227   :  { %v1423_v50 = vrot.slane %v1422_v56, 2 }
 0x229   :  { %v1424_v49 = vadd.f32 %v1423_v50, %v1422_v56 }
 0x22a   :  { %v1390_v31 = vpop.f32.mrf.mxu1 }
 0x22b   :  { %v1399_v24 = vadd.f32 %v1397_v55, %v1390_v31  ;;  %v1425_v46 = vrot.slane %v1424_v49, 1 }
 0x22d   :  { %1401 = vst.msk [vmem:[#allocation2 + $0x10] sm:$0xff] %vm41_vm1, %v1399_v24  ;;  %v1426_v1 = vadd.f32 %v1425_v46, %v1424_v49 }
 0x22f   :  { %1428 = vst.msk [vmem:[#allocation6] sm:$0x1] %vm1427_vm6, %v1426_v1 }
 0x234   :  { %v1429_v5 = vld [vmem:[#allocation2 + $0x10] sm:$0xff] }
 0x235   :  { %v1431_v4 = vmul.f32 %v1429_v5, %v1406_v43 }
 0x237   :  { %v1433_v2 = vsub.f32 %v1431_v4, %v1408_v23 }
 0x239   :  { %v1435_v30 = vmul.f32 %v1433_v2, %v1433_v2 }
 0x23b   :  { %v1437_v22 = vsel %vm41_vm1, %v1435_v30, 0.0 }
 0x24f   :  { %v1393_v8 = vpop.f32.mrf.mxu3 }
 0x250   :  { %v1400_v37 = vadd.f32 %v1398_v28, %v1393_v8 }
 0x252   :  { %1402 = vst.msk [vmem:[#allocation2 + $0x18] sm:$0xff] %vm41_vm1, %v1400_v37 }
 0x259   :  { %v1430_v32 = vld [vmem:[#allocation2 + $0x18] sm:$0xff] }
 0x25a   :  { %v1432_v6 = vmul.f32 %v1430_v32, %v1407_v59 }
 0x25c   :  { %v1434_v19 = vsub.f32 %v1432_v6, %v1409_v39 }
 0x25e   :  { %v1436_v34 = vmul.f32 %v1434_v19, %v1434_v19 }
 0x260   :  { %v1438_v54 = vsel %vm41_vm1, %v1436_v34, 0.0 }
 0x261   :  { %v1439_v51 = vadd.f32 %v1438_v54, %v1437_v22 }
 0x263   :  { %v1440_v44 = vrot.slane %v1439_v51, 4 }
 0x265   :  { %v1441_v11 = vadd.f32 %v1440_v44, %v1439_v51 }
 0x267   :  { %v1442_v62 = vrot.slane %v1441_v11, 2 }
 0x269   :  { %v1443_v7 = vadd.f32 %v1442_v62, %v1441_v11 }
 0x26b   :  { %v1444_v17 = vrot.slane %v1443_v7, 1 }
 0x26d   :  { %v1445_v26 = vadd.f32 %v1444_v17, %v1443_v7 }
 0x26f   :  { %1446 = vst.msk [vmem:[#allocation6 + $0x1] sm:$0x1] %vm1427_vm6, %v1445_v26 }
 0x270   :  { %1457 = dma.vmem_to_hbm [thread:$0]  %s1453_s4, 32, %s1455_s15, [#allocation5]  }
 0x271   :  { %1562 = dma.done.wait [#allocation5], 32  }
 0x272   :  { %1563 = vsyncadd [#allocation5], 4294967264 }
 0x273   :  { %1462 = vsyncpa [#allocation4], 1 }
 0x274   :  { %1463 = vsyncpa [#allocation5], 1 }

</bundles_post_ra>
